<compile_context>
chip_gen: v6e
topology: v6e:2x2x1
jax: 0.10.0
libtpu: 0.0.40
codegen_flags: <defaults>
</compile_context>

<pallas_src>
import functools

import jax
import jax.numpy as jnp
from jax.experimental import pallas as pl
from jax.experimental.pallas import tpu as pltpu


def _mha_kernel(
    x_ref, adj_ref,
    ln_g_ref, ln_b_ref,
    wqkv_ref, bqkv_ref,
    wfc_ref, bfc_ref,
    wy3_ref, by3_ref, wu2_ref, wug_ref,
    o_ref,
    *, n_head: int, d_k: int,
):
    Bb, L, D = x_ref.shape            # batch tile, seq len, d_model
    HD = n_head * d_k
    R = Bb * L                        # rows processed per grid step
    BH = Bb * n_head

    x = x_ref[...].reshape(R, D)      # flatten (batch, seq) -> rows; lane dim kept
    residual = x

    # ---- LayerNorm (eps = 1e-5, like nn.LayerNorm default) ----
    mean = jnp.mean(x, axis=-1, keepdims=True)
    var = jnp.mean(jnp.square(x - mean), axis=-1, keepdims=True)
    xn = (x - mean) * (1.0 / jnp.sqrt(var + 1e-5))
    xn = xn * ln_g_ref[...] + ln_b_ref[...]

    # ---- Fused Q|K|V projection: one wide matmul instead of 3 skinny ones ----
    qkv = jnp.dot(xn, wqkv_ref[...], preferred_element_type=jnp.float32) + bqkv_ref[...]

    def to_heads(t):                  # (R, H*d_k) -> (Bb*H, L, d_k)
        return t.reshape(Bb, L, n_head, d_k).transpose(0, 2, 1, 3).reshape(BH, L, d_k)

    qh = to_heads(qkv[:, :HD])
    kh = to_heads(qkv[:, HD:2 * HD])
    vh = to_heads(qkv[:, 2 * HD:])

    # ---- Head-batched scaled dot-product attention (no per-head Python loop) ----
    inv_temp = 1.0 / (float(d_k) ** 0.5)
    adj = adj_ref[...].reshape(BH, L, L)          # already PyTorch-quirk-permuted
    neg = jnp.where(adj == 0, -1e30, 0.0)         # mask computed once (finite; no NaN hazard)

    s = jnp.einsum("bld,bmd->blm", qh, kh,
                   preferred_element_type=jnp.float32) * inv_temp + neg
    m = jnp.max(s, axis=-1, keepdims=True)
    p = jnp.exp(s - m)
    denom = jnp.sum(p, axis=-1, keepdims=True)
    p = p * (1.0 / denom)                         # single reciprocal per row, then multiply
    ctx = jnp.einsum("blm,bmd->bld", p, vh,
                     preferred_element_type=jnp.float32)          # (Bb*H, L, d_k)

    attn_out = ctx.reshape(Bb, n_head, L, d_k).transpose(0, 2, 1, 3).reshape(R, HD)

    # ---- FC + ReLU (dropout = 0 -> identity) ----
    y = jnp.dot(attn_out, wfc_ref[...], preferred_element_type=jnp.float32) + bfc_ref[...]
    y = jnp.maximum(y, 0.0)

    # ---- GRU gate: gate(residual, y); shared-LHS matmuls fused ----
    # wy3 = [Wwz | Wwr | Wwg] (D,3D), by3 = [bwz | 0 | 0], wu2 = [Wuz | Wur] (D,2D)
    y3 = jnp.dot(y, wy3_ref[...], preferred_element_type=jnp.float32) + by3_ref[...]
    u2 = jnp.dot(residual, wu2_ref[...], preferred_element_type=jnp.float32)
    z = jax.nn.sigmoid(y3[:, :D] + u2[:, :D])
    r = jax.nn.sigmoid(y3[:, D:2 * D] + u2[:, D:])
    g = jnp.dot(r * residual, wug_ref[...], preferred_element_type=jnp.float32)
    h_hat = jnp.tanh(y3[:, 2 * D:] + g)
    out = (1.0 - z) * residual + z * h_hat

    o_ref[...] = out.reshape(Bb, L, D).astype(o_ref.dtype)


def multi_head_attention(x, adj, params, *, n_head, d_k, block_b=None):
    B, L, D = x.shape
    assert adj.shape == (B, L, L)

    # Batch tile: aim for >=~256 rows per grid step; must divide B.
    if block_b is None:
        block_b = min(B, max(1, 256 // L))
    while B % block_b:
        block_b -= 1
    grid_b = B // block_b

    # ---- wrapper-side weight packing (shared-LHS matmul fusion) ----
    wqkv = jnp.concatenate([params["wq"], params["wk"], params["wv"]], axis=1)   # (D, 3*H*dk)
    bqkv = jnp.concatenate([params["bq"], params["bk"], params["bv"]], axis=1)   # (1, 3*H*dk)
    zb = jnp.zeros_like(params["bwz"])
    wy3 = jnp.concatenate([params["wwz"], params["wwr"], params["wwg"]], axis=1)  # (D, 3D)
    by3 = jnp.concatenate([params["bwz"], zb, zb], axis=1)                        # (1, 3D)
    wu2 = jnp.concatenate([params["wuz"], params["wur"]], axis=1)                 # (D, 2D)

    # ---- replicate the PyTorch q/k/v-vs-adj flattening quirk ----
    # attention slab i = h*B + b is masked with adj[(h*B + b) // n_head]
    src = (jnp.arange(n_head)[None, :] * B + jnp.arange(B)[:, None]) // n_head    # (B, H)
    adj_perm = adj[src]                                                           # (B, H, L, L)

    weights = [
        params["ln_g"], params["ln_b"],
        wqkv, bqkv,
        params["wfc"], params["bfc"],
        wy3, by3, wu2, params["wug"],
    ]

    def full_spec(arr):
        nd = arr.ndim
        return pl.BlockSpec(arr.shape, lambda b, _nd=nd: (0,) * _nd)

    in_specs = [
        pl.BlockSpec((block_b, L, D), lambda b: (b, 0, 0)),
        pl.BlockSpec((block_b, n_head, L, L), lambda b: (b, 0, 0, 0)),
    ] + [full_spec(w) for w in weights]

    kern = functools.partial(_mha_kernel, n_head=n_head, d_k=d_k)

    return pl.pallas_call(
        kern,
        out_shape=jax.ShapeDtypeStruct((B, L, D), jnp.float32),
        grid_spec=pltpu.PrefetchScalarGridSpec(
            num_scalar_prefetch=0,
            grid=(grid_b,),
            in_specs=in_specs,
            out_specs=pl.BlockSpec((block_b, L, D), lambda b: (b, 0, 0)),
        ),
        compiler_params=pltpu.CompilerParams(dimension_semantics=("parallel",)),
    )(x, adj_perm, *weights)


# ---------------- pure-JAX reference (mirrors the PyTorch forward exactly) ----------------
def reference_forward(x, adj, p, *, n_head, d_k):
    B, L, D = x.shape
    residual = x
    mean = jnp.mean(x, axis=-1, keepdims=True)
    var = jnp.mean((x - mean) ** 2, axis=-1, keepdims=True)
    xn = (x - mean) / jnp.sqrt(var + 1e-5) * p["ln_g"][0] + p["ln_b"][0]

    q = xn @ p["wq"] + p["bq"][0]
    k = xn @ p["wk"] + p["bk"][0]
    v = xn @ p["wv"] + p["bv"][0]

    def split(t):  # (B, L, H*dk) -> (H*B, L, dk)
        t = t.reshape(B, L, n_head, d_k).transpose(2, 0, 1, 3)
        return t.reshape(n_head * B, L, d_k)

    qh, kh, vh = split(q), split(k), split(v)
    adj_r = jnp.tile(adj[:, None], (1, n_head, 1, 1)).reshape(-1, L, L)  # PyTorch ordering quirk
    s = jnp.einsum("bld,bmd->blm", qh, kh) / (d_k ** 0.5)
    s = jnp.where(adj_r == 0, -jnp.inf, s)
    attn = jax.nn.softmax(s, axis=-1)
    out = jnp.einsum("blm,bmd->bld", attn, vh)
    out = out.reshape(n_head, B, L, d_k).transpose(1, 2, 0, 3).reshape(B, L, n_head * d_k)
    y = jax.nn.relu(out @ p["wfc"] + p["bfc"][0])

    z = jax.nn.sigmoid(y @ p["wwz"] + p["bwz"][0] + residual @ p["wuz"])
    r = jax.nn.sigmoid(y @ p["wwr"] + residual @ p["wur"])
    h_hat = jnp.tanh(y @ p["wwg"] + (r * residual) @ p["wug"])
    return (1.0 - z) * residual + z * h_hat


def init_params(key, d_model, n_head, d_k):
    ks = jax.random.split(key, 16)
    std_qkv = (2.0 / (d_model + d_k)) ** 0.5
    bnd_dm = 1.0 / (d_model ** 0.5)
    bnd_hd = 1.0 / ((n_head * d_k) ** 0.5)
    std_fc = (2.0 / (d_model + n_head * d_k)) ** 0.5  # xavier normal

    def u(k, shape, bound):
        return jax.random.uniform(k, shape, jnp.float32, -bound, bound)

    p = {
        "ln_g": jnp.ones((1, d_model), jnp.float32),
        "ln_b": jnp.zeros((1, d_model), jnp.float32),
        # stored pre-transposed: (in, out)
        "wq": std_qkv * jax.random.normal(ks[0], (d_model, n_head * d_k), jnp.float32),
        "bq": u(ks[1], (1, n_head * d_k), bnd_dm),
        "wk": std_qkv * jax.random.normal(ks[2], (d_model, n_head * d_k), jnp.float32),
        "bk": u(ks[3], (1, n_head * d_k), bnd_dm),
        "wv": std_qkv * jax.random.normal(ks[4], (d_model, n_head * d_k), jnp.float32),
        "bv": u(ks[5], (1, n_head * d_k), bnd_dm),
        "wfc": std_fc * jax.random.normal(ks[6], (n_head * d_k, d_model), jnp.float32),
        "bfc": u(ks[7], (1, d_model), bnd_hd),
        "wwr": u(ks[8], (d_model, d_model), bnd_dm),
        "wur": u(ks[9], (d_model, d_model), bnd_dm),
        "wwz": u(ks[10], (d_model, d_model), bnd_dm),
        "bwz": jnp.full((1, d_model), -2.0, jnp.float32),  # GRUGate.init_bias()
        "wuz": u(ks[11], (d_model, d_model), bnd_dm),
        "wwg": u(ks[12], (d_model, d_model), bnd_dm),
        "wug": u(ks[13], (d_model, d_model), bnd_dm),
    }
    return p


if __name__ == "__main__":
    B, L, d_model, n_head, d_k = 2, 8, 32, 4, 8

    key = jax.random.PRNGKey(0)
    kx, kadj, kp = jax.random.split(key, 3)

    x = jax.random.normal(kx, (B, L, d_model), jnp.float32)
    adj = (jax.random.uniform(kadj, (B, L, L)) > 0.4).astype(jnp.float32)
    # guarantee every row has at least one unmasked entry (self-edge)
    adj = jnp.maximum(adj, jnp.eye(L, dtype=jnp.float32)[None])

    params = init_params(kp, d_model, n_head, d_k)

    out = multi_head_attention(x, adj, params, n_head=n_head, d_k=d_k)
    out = jax.block_until_ready(out)

    ref = reference_forward(x, adj, params, n_head=n_head, d_k=d_k)
    assert out.shape == (B, L, d_model)
    assert jnp.allclose(out, ref, atol=2e-4, rtol=2e-4), "kernel mismatch vs reference"

    # TODO(synk): for very large d_model, cast matmul operands to bf16 (f32 accum) and
    # single-buffer the constant weight blocks to fit v7x's 64 MiB VMEM.
    print("KERNEL_OK")
</pallas_src>

<mosaic_0001>
module attributes {stable_mosaic.version = 11 : i64} {
  func.func @_mha_kernel(%arg0: i32, %arg1: memref<2x8x32xf32, #tpu.memory_space<vmem>>, %arg2: memref<2x4x8x8xf32, #tpu.memory_space<vmem>>, %arg3: memref<1x32xf32, #tpu.memory_space<vmem>>, %arg4: memref<1x32xf32, #tpu.memory_space<vmem>>, %arg5: memref<32x96xf32, #tpu.memory_space<vmem>>, %arg6: memref<1x96xf32, #tpu.memory_space<vmem>>, %arg7: memref<32x32xf32, #tpu.memory_space<vmem>>, %arg8: memref<1x32xf32, #tpu.memory_space<vmem>>, %arg9: memref<32x96xf32, #tpu.memory_space<vmem>>, %arg10: memref<1x96xf32, #tpu.memory_space<vmem>>, %arg11: memref<32x64xf32, #tpu.memory_space<vmem>>, %arg12: memref<32x32xf32, #tpu.memory_space<vmem>>, %arg13: memref<2x8x32xf32, #tpu.memory_space<vmem>>) attributes {dimension_semantics = [#tpu.dimension_semantics<parallel>], iteration_bounds = array<i64: 1>, scalar_prefetch = 0 : i64, scratch_operands = 0 : i64, tpu.core_type = #tpu.core_type<tc>, window_params = [{transform_indices = @transform_0, window_bounds = array<i64: 2, 8, 32>}, {transform_indices = @transform_1, window_bounds = array<i64: 2, 4, 8, 8>}, {pipeline_mode = #tpu.pipeline_mode<synchronous>, transform_indices = @transform_2, window_bounds = array<i64: 1, 32>}, {pipeline_mode = #tpu.pipeline_mode<synchronous>, transform_indices = @transform_3, window_bounds = array<i64: 1, 32>}, {pipeline_mode = #tpu.pipeline_mode<synchronous>, transform_indices = @transform_4, window_bounds = array<i64: 32, 96>}, {pipeline_mode = #tpu.pipeline_mode<synchronous>, transform_indices = @transform_5, window_bounds = array<i64: 1, 96>}, {pipeline_mode = #tpu.pipeline_mode<synchronous>, transform_indices = @transform_6, window_bounds = array<i64: 32, 32>}, {pipeline_mode = #tpu.pipeline_mode<synchronous>, transform_indices = @transform_7, window_bounds = array<i64: 1, 32>}, {pipeline_mode = #tpu.pipeline_mode<synchronous>, transform_indices = @transform_8, window_bounds = array<i64: 32, 96>}, {pipeline_mode = #tpu.pipeline_mode<synchronous>, transform_indices = @transform_9, window_bounds = array<i64: 1, 96>}, {pipeline_mode = #tpu.pipeline_mode<synchronous>, transform_indices = @transform_10, window_bounds = array<i64: 32, 64>}, {pipeline_mode = #tpu.pipeline_mode<synchronous>, transform_indices = @transform_11, window_bounds = array<i64: 32, 32>}, {transform_indices = @transform_12, window_bounds = array<i64: 2, 8, 32>}]} {
    %c0 = arith.constant 0 : index
    %c0_0 = arith.constant 0 : index
    %c0_1 = arith.constant 0 : index
    %0 = vector.load %arg1[%c0, %c0_0, %c0_1] : memref<2x8x32xf32, #tpu.memory_space<vmem>>, vector<2x8x32xf32>
    %1 = vector.shape_cast %0 : vector<2x8x32xf32> to vector<16x32xf32>
    %cst = arith.constant dense<0.000000e+00> : vector<16xf32>
    %2 = vector.multi_reduction <add>, %1, %cst [1] : vector<16x32xf32> to vector<16xf32>
    %3 = vector.shape_cast %2 : vector<16xf32> to vector<16x1xf32>
    %cst_2 = arith.constant 3.200000e+01 : f32
    %4 = vector.broadcast %cst_2 : f32 to vector<16x1xf32>
    %5 = arith.divf %3, %4 : vector<16x1xf32>
    %6 = vector.broadcast %5 : vector<16x1xf32> to vector<16x32xf32>
    %7 = arith.subf %1, %6 : vector<16x32xf32>
    %8 = arith.mulf %7, %7 : vector<16x32xf32>
    %cst_3 = arith.constant dense<0.000000e+00> : vector<16xf32>
    %9 = vector.multi_reduction <add>, %8, %cst_3 [1] : vector<16x32xf32> to vector<16xf32>
    %10 = vector.shape_cast %9 : vector<16xf32> to vector<16x1xf32>
    %cst_4 = arith.constant 3.200000e+01 : f32
    %11 = vector.broadcast %cst_4 : f32 to vector<16x1xf32>
    %12 = arith.divf %10, %11 : vector<16x1xf32>
    %13 = vector.broadcast %5 : vector<16x1xf32> to vector<16x32xf32>
    %14 = arith.subf %1, %13 : vector<16x32xf32>
    %cst_5 = arith.constant 9.99999974E-6 : f32
    %15 = vector.broadcast %cst_5 : f32 to vector<16x1xf32>
    %16 = arith.addf %12, %15 : vector<16x1xf32>
    %17 = math.sqrt %16 : vector<16x1xf32>
    %cst_6 = arith.constant 1.000000e+00 : f32
    %18 = vector.broadcast %cst_6 : f32 to vector<16x1xf32>
    %19 = arith.divf %18, %17 : vector<16x1xf32>
    %20 = vector.broadcast %19 : vector<16x1xf32> to vector<16x32xf32>
    %21 = arith.mulf %14, %20 : vector<16x32xf32>
    %c0_7 = arith.constant 0 : index
    %c0_8 = arith.constant 0 : index
    %22 = vector.load %arg3[%c0_7, %c0_8] : memref<1x32xf32, #tpu.memory_space<vmem>>, vector<1x32xf32>
    %23 = vector.broadcast %22 : vector<1x32xf32> to vector<16x32xf32>
    %24 = arith.mulf %21, %23 : vector<16x32xf32>
    %c0_9 = arith.constant 0 : index
    %c0_10 = arith.constant 0 : index
    %25 = vector.load %arg4[%c0_9, %c0_10] : memref<1x32xf32, #tpu.memory_space<vmem>>, vector<1x32xf32>
    %26 = vector.broadcast %25 : vector<1x32xf32> to vector<16x32xf32>
    %27 = arith.addf %24, %26 : vector<16x32xf32>
    %c0_11 = arith.constant 0 : index
    %c0_12 = arith.constant 0 : index
    %28 = vector.load %arg5[%c0_11, %c0_12] : memref<32x96xf32, #tpu.memory_space<vmem>>, vector<32x96xf32>
    %cst_13 = arith.constant dense<0.000000e+00> : vector<16x96xf32>
    %29 = tpu.matmul %27, %28, %cst_13 {dimension_numbers = #tpu.dot_dimension_numbers<[1], [0], [0], [1], [0, 0, 1, 1], [], []>} : vector<16x32xf32>, vector<32x96xf32>, vector<16x96xf32> -> vector<16x96xf32>
    %c0_14 = arith.constant 0 : index
    %c0_15 = arith.constant 0 : index
    %30 = vector.load %arg6[%c0_14, %c0_15] : memref<1x96xf32, #tpu.memory_space<vmem>>, vector<1x96xf32>
    %31 = vector.broadcast %30 : vector<1x96xf32> to vector<16x96xf32>
    %32 = arith.addf %29, %31 : vector<16x96xf32>
    %33 = vector.extract_strided_slice %32 {offsets = [0, 0], sizes = [16, 32], strides = [1, 1]} : vector<16x96xf32> to vector<16x32xf32>
    %34 = vector.shape_cast %33 : vector<16x32xf32> to vector<2x8x4x8xf32>
    %35 = tpu.transpose %34, [0, 2, 1, 3] : vector<2x8x4x8xf32> -> vector<2x4x8x8xf32>
    %36 = vector.shape_cast %35 : vector<2x4x8x8xf32> to vector<8x8x8xf32>
    %37 = vector.extract_strided_slice %32 {offsets = [0, 32], sizes = [16, 32], strides = [1, 1]} : vector<16x96xf32> to vector<16x32xf32>
    %38 = vector.shape_cast %37 : vector<16x32xf32> to vector<2x8x4x8xf32>
    %39 = tpu.transpose %38, [0, 2, 1, 3] : vector<2x8x4x8xf32> -> vector<2x4x8x8xf32>
    %40 = vector.shape_cast %39 : vector<2x4x8x8xf32> to vector<8x8x8xf32>
    %41 = vector.extract_strided_slice %32 {offsets = [0, 64], sizes = [16, 32], strides = [1, 1]} : vector<16x96xf32> to vector<16x32xf32>
    %42 = vector.shape_cast %41 : vector<16x32xf32> to vector<2x8x4x8xf32>
    %43 = tpu.transpose %42, [0, 2, 1, 3] : vector<2x8x4x8xf32> -> vector<2x4x8x8xf32>
    %44 = vector.shape_cast %43 : vector<2x4x8x8xf32> to vector<8x8x8xf32>
    %c0_16 = arith.constant 0 : index
    %c0_17 = arith.constant 0 : index
    %c0_18 = arith.constant 0 : index
    %c0_19 = arith.constant 0 : index
    %45 = vector.load %arg2[%c0_16, %c0_17, %c0_18, %c0_19] : memref<2x4x8x8xf32, #tpu.memory_space<vmem>>, vector<2x4x8x8xf32>
    %46 = vector.shape_cast %45 : vector<2x4x8x8xf32> to vector<8x8x8xf32>
    %cst_20 = arith.constant 0.000000e+00 : f32
    %47 = vector.broadcast %cst_20 : f32 to vector<8x8x8xf32>
    %48 = arith.cmpf oeq, %46, %47 : vector<8x8x8xf32>
    %cst_21 = arith.constant -1.000000e+30 : f32
    %cst_22 = arith.constant 0.000000e+00 : f32
    %49 = vector.broadcast %cst_21 : f32 to vector<8x8x8xf32>
    %50 = vector.broadcast %cst_22 : f32 to vector<8x8x8xf32>
    %51 = arith.select %48, %49, %50 : vector<8x8x8xi1>, vector<8x8x8xf32>
    "tpu.trace_start"() <{level = 10 : i32, message = "bld,bmd->blm"}> : () -> ()
    %cst_23 = arith.constant dense<0.000000e+00> : vector<8x8x8xf32>
    %52 = tpu.matmul %36, %40, %cst_23 {dimension_numbers = #tpu.dot_dimension_numbers<[2], [2], [1], [1], [0, 0, 0, 1, 1, 1], [0], [0]>} : vector<8x8x8xf32>, vector<8x8x8xf32>, vector<8x8x8xf32> -> vector<8x8x8xf32>
    "tpu.trace_stop"() : () -> ()
    %cst_24 = arith.constant 0.353553385 : f32
    %53 = vector.broadcast %cst_24 : f32 to vector<8x8x8xf32>
    %54 = arith.mulf %52, %53 : vector<8x8x8xf32>
    %55 = arith.addf %54, %51 : vector<8x8x8xf32>
    %cst_25 = arith.constant dense<0xFF800000> : vector<8x8xf32>
    %56 = vector.multi_reduction <maximumf>, %55, %cst_25 [2] : vector<8x8x8xf32> to vector<8x8xf32>
    %57 = vector.shape_cast %56 : vector<8x8xf32> to vector<8x8x1xf32>
    %58 = vector.broadcast %57 : vector<8x8x1xf32> to vector<8x8x8xf32>
    %59 = arith.subf %55, %58 : vector<8x8x8xf32>
    %60 = math.exp %59 : vector<8x8x8xf32>
    %cst_26 = arith.constant dense<0.000000e+00> : vector<8x8xf32>
    %61 = vector.multi_reduction <add>, %60, %cst_26 [2] : vector<8x8x8xf32> to vector<8x8xf32>
    %62 = vector.shape_cast %61 : vector<8x8xf32> to vector<8x8x1xf32>
    %cst_27 = arith.constant 1.000000e+00 : f32
    %63 = vector.broadcast %cst_27 : f32 to vector<8x8x1xf32>
    %64 = arith.divf %63, %62 : vector<8x8x1xf32>
    %65 = vector.broadcast %64 : vector<8x8x1xf32> to vector<8x8x8xf32>
    %66 = arith.mulf %60, %65 : vector<8x8x8xf32>
    "tpu.trace_start"() <{level = 10 : i32, message = "blm,bmd->bld"}> : () -> ()
    %cst_28 = arith.constant dense<0.000000e+00> : vector<8x8x8xf32>
    %67 = tpu.matmul %66, %44, %cst_28 {dimension_numbers = #tpu.dot_dimension_numbers<[2], [1], [1], [2], [0, 0, 0, 1, 1, 2], [0], [0]>} : vector<8x8x8xf32>, vector<8x8x8xf32>, vector<8x8x8xf32> -> vector<8x8x8xf32>
    "tpu.trace_stop"() : () -> ()
    %68 = vector.shape_cast %67 : vector<8x8x8xf32> to vector<2x4x8x8xf32>
    %69 = tpu.transpose %68, [0, 2, 1, 3] : vector<2x4x8x8xf32> -> vector<2x8x4x8xf32>
    %70 = vector.shape_cast %69 : vector<2x8x4x8xf32> to vector<16x32xf32>
    %c0_29 = arith.constant 0 : index
    %c0_30 = arith.constant 0 : index
    %71 = vector.load %arg7[%c0_29, %c0_30] : memref<32x32xf32, #tpu.memory_space<vmem>>, vector<32x32xf32>
    %cst_31 = arith.constant dense<0.000000e+00> : vector<16x32xf32>
    %72 = tpu.matmul %70, %71, %cst_31 {dimension_numbers = #tpu.dot_dimension_numbers<[1], [0], [0], [1], [0, 0, 1, 1], [], []>} : vector<16x32xf32>, vector<32x32xf32>, vector<16x32xf32> -> vector<16x32xf32>
    %c0_32 = arith.constant 0 : index
    %c0_33 = arith.constant 0 : index
    %73 = vector.load %arg8[%c0_32, %c0_33] : memref<1x32xf32, #tpu.memory_space<vmem>>, vector<1x32xf32>
    %74 = vector.broadcast %73 : vector<1x32xf32> to vector<16x32xf32>
    %75 = arith.addf %72, %74 : vector<16x32xf32>
    %cst_34 = arith.constant 0.000000e+00 : f32
    %76 = vector.broadcast %cst_34 : f32 to vector<16x32xf32>
    %77 = arith.maximumf %75, %76 : vector<16x32xf32>
    %c0_35 = arith.constant 0 : index
    %c0_36 = arith.constant 0 : index
    %78 = vector.load %arg9[%c0_35, %c0_36] : memref<32x96xf32, #tpu.memory_space<vmem>>, vector<32x96xf32>
    %cst_37 = arith.constant dense<0.000000e+00> : vector<16x96xf32>
    %79 = tpu.matmul %77, %78, %cst_37 {dimension_numbers = #tpu.dot_dimension_numbers<[1], [0], [0], [1], [0, 0, 1, 1], [], []>} : vector<16x32xf32>, vector<32x96xf32>, vector<16x96xf32> -> vector<16x96xf32>
    %c0_38 = arith.constant 0 : index
    %c0_39 = arith.constant 0 : index
    %80 = vector.load %arg10[%c0_38, %c0_39] : memref<1x96xf32, #tpu.memory_space<vmem>>, vector<1x96xf32>
    %81 = vector.broadcast %80 : vector<1x96xf32> to vector<16x96xf32>
    %82 = arith.addf %79, %81 : vector<16x96xf32>
    %c0_40 = arith.constant 0 : index
    %c0_41 = arith.constant 0 : index
    %83 = vector.load %arg11[%c0_40, %c0_41] : memref<32x64xf32, #tpu.memory_space<vmem>>, vector<32x64xf32>
    %cst_42 = arith.constant dense<0.000000e+00> : vector<16x64xf32>
    %84 = tpu.matmul %1, %83, %cst_42 {dimension_numbers = #tpu.dot_dimension_numbers<[1], [0], [0], [1], [0, 0, 1, 1], [], []>} : vector<16x32xf32>, vector<32x64xf32>, vector<16x64xf32> -> vector<16x64xf32>
    %85 = vector.extract_strided_slice %82 {offsets = [0, 0], sizes = [16, 32], strides = [1, 1]} : vector<16x96xf32> to vector<16x32xf32>
    %86 = vector.extract_strided_slice %84 {offsets = [0, 0], sizes = [16, 32], strides = [1, 1]} : vector<16x64xf32> to vector<16x32xf32>
    %87 = arith.addf %85, %86 : vector<16x32xf32>
    %88 = arith.negf %87 : vector<16x32xf32>
    %89 = math.exp %88 : vector<16x32xf32>
    %cst_43 = arith.constant 1.000000e+00 : f32
    %90 = vector.broadcast %cst_43 : f32 to vector<16x32xf32>
    %91 = arith.addf %90, %89 : vector<16x32xf32>
    %92 = arith.divf %90, %91 : vector<16x32xf32>
    %93 = vector.extract_strided_slice %82 {offsets = [0, 32], sizes = [16, 32], strides = [1, 1]} : vector<16x96xf32> to vector<16x32xf32>
    %94 = vector.extract_strided_slice %84 {offsets = [0, 32], sizes = [16, 32], strides = [1, 1]} : vector<16x64xf32> to vector<16x32xf32>
    %95 = arith.addf %93, %94 : vector<16x32xf32>
    %96 = arith.negf %95 : vector<16x32xf32>
    %97 = math.exp %96 : vector<16x32xf32>
    %cst_44 = arith.constant 1.000000e+00 : f32
    %98 = vector.broadcast %cst_44 : f32 to vector<16x32xf32>
    %99 = arith.addf %98, %97 : vector<16x32xf32>
    %100 = arith.divf %98, %99 : vector<16x32xf32>
    %101 = arith.mulf %100, %1 : vector<16x32xf32>
    %c0_45 = arith.constant 0 : index
    %c0_46 = arith.constant 0 : index
    %102 = vector.load %arg12[%c0_45, %c0_46] : memref<32x32xf32, #tpu.memory_space<vmem>>, vector<32x32xf32>
    %cst_47 = arith.constant dense<0.000000e+00> : vector<16x32xf32>
    %103 = tpu.matmul %101, %102, %cst_47 {dimension_numbers = #tpu.dot_dimension_numbers<[1], [0], [0], [1], [0, 0, 1, 1], [], []>} : vector<16x32xf32>, vector<32x32xf32>, vector<16x32xf32> -> vector<16x32xf32>
    %104 = vector.extract_strided_slice %82 {offsets = [0, 64], sizes = [16, 32], strides = [1, 1]} : vector<16x96xf32> to vector<16x32xf32>
    %105 = arith.addf %104, %103 : vector<16x32xf32>
    %106 = math.tanh %105 : vector<16x32xf32>
    %cst_48 = arith.constant 1.000000e+00 : f32
    %107 = vector.broadcast %cst_48 : f32 to vector<16x32xf32>
    %108 = arith.subf %107, %92 : vector<16x32xf32>
    %109 = arith.mulf %108, %1 : vector<16x32xf32>
    %110 = arith.mulf %92, %106 : vector<16x32xf32>
    %111 = arith.addf %109, %110 : vector<16x32xf32>
    %112 = vector.shape_cast %111 : vector<16x32xf32> to vector<2x8x32xf32>
    %c0_49 = arith.constant 0 : index
    %c0_50 = arith.constant 0 : index
    %c0_51 = arith.constant 0 : index
    %113 = vector.load %arg13[%c0_49, %c0_50, %c0_51] : memref<2x8x32xf32, #tpu.memory_space<vmem>>, vector<2x8x32xf32>
    tpu.vector_store %arg13[%c0_49, %c0_50, %c0_51], %112 {strides = array<i32>} : memref<2x8x32xf32, #tpu.memory_space<vmem>>, vector<2x8x32xf32>,
    return
  }
  func.func @transform_0(%arg0: i32) -> (i32, i32, i32) {
    %c0_i32 = arith.constant 0 : i32
    %c0_i32_0 = arith.constant 0 : i32
    %c0_i32_1 = arith.constant 0 : i32
    return %arg0, %c0_i32, %c0_i32_0 : i32, i32, i32
  }
  func.func @transform_1(%arg0: i32) -> (i32, i32, i32, i32) {
    %c0_i32 = arith.constant 0 : i32
    %c0_i32_0 = arith.constant 0 : i32
    %c0_i32_1 = arith.constant 0 : i32
    %c0_i32_2 = arith.constant 0 : i32
    return %arg0, %c0_i32, %c0_i32_0, %c0_i32_1 : i32, i32, i32, i32
  }
  func.func @transform_2(%arg0: i32) -> (i32, i32) {
    %c0_i32 = arith.constant 0 : i32
    %c0_i32_0 = arith.constant 0 : i32
    %c0_i32_1 = arith.constant 0 : i32
    return %c0_i32, %c0_i32_0 : i32, i32
  }
  func.func @transform_3(%arg0: i32) -> (i32, i32) {
    %c0_i32 = arith.constant 0 : i32
    %c0_i32_0 = arith.constant 0 : i32
    %c0_i32_1 = arith.constant 0 : i32
    return %c0_i32, %c0_i32_0 : i32, i32
  }
  func.func @transform_4(%arg0: i32) -> (i32, i32) {
    %c0_i32 = arith.constant 0 : i32
    %c0_i32_0 = arith.constant 0 : i32
    %c0_i32_1 = arith.constant 0 : i32
    return %c0_i32, %c0_i32_0 : i32, i32
  }
  func.func @transform_5(%arg0: i32) -> (i32, i32) {
    %c0_i32 = arith.constant 0 : i32
    %c0_i32_0 = arith.constant 0 : i32
    %c0_i32_1 = arith.constant 0 : i32
    return %c0_i32, %c0_i32_0 : i32, i32
  }
  func.func @transform_6(%arg0: i32) -> (i32, i32) {
    %c0_i32 = arith.constant 0 : i32
    %c0_i32_0 = arith.constant 0 : i32
    %c0_i32_1 = arith.constant 0 : i32
    return %c0_i32, %c0_i32_0 : i32, i32
  }
  func.func @transform_7(%arg0: i32) -> (i32, i32) {
    %c0_i32 = arith.constant 0 : i32
    %c0_i32_0 = arith.constant 0 : i32
    %c0_i32_1 = arith.constant 0 : i32
    return %c0_i32, %c0_i32_0 : i32, i32
  }
  func.func @transform_8(%arg0: i32) -> (i32, i32) {
    %c0_i32 = arith.constant 0 : i32
    %c0_i32_0 = arith.constant 0 : i32
    %c0_i32_1 = arith.constant 0 : i32
    return %c0_i32, %c0_i32_0 : i32, i32
  }
  func.func @transform_9(%arg0: i32) -> (i32, i32) {
    %c0_i32 = arith.constant 0 : i32
    %c0_i32_0 = arith.constant 0 : i32
    %c0_i32_1 = arith.constant 0 : i32
    return %c0_i32, %c0_i32_0 : i32, i32
  }
  func.func @transform_10(%arg0: i32) -> (i32, i32) {
    %c0_i32 = arith.constant 0 : i32
    %c0_i32_0 = arith.constant 0 : i32
    %c0_i32_1 = arith.constant 0 : i32
    return %c0_i32, %c0_i32_0 : i32, i32
  }
  func.func @transform_11(%arg0: i32) -> (i32, i32) {
    %c0_i32 = arith.constant 0 : i32
    %c0_i32_0 = arith.constant 0 : i32
    %c0_i32_1 = arith.constant 0 : i32
    return %c0_i32, %c0_i32_0 : i32, i32
  }
  func.func @transform_12(%arg0: i32) -> (i32, i32, i32) {
    %c0_i32 = arith.constant 0 : i32
    %c0_i32_0 = arith.constant 0 : i32
    %c0_i32_1 = arith.constant 0 : i32
    return %arg0, %c0_i32, %c0_i32_0 : i32, i32, i32
  }
}

</mosaic_0001>

<bundles_post_ra>
// kernel: tpu_custom_call.1
= control target key start
LH: loop header
LB: loop body
LE: loop exit
PB: predicated region body
PF: predicated region fallthrough
CT: control target
= control target key end

     0   :  { %17 = vsyncpa [#allocation3], 0  ;;  %s4317_s0 = inlined_call_operand.hbm [shape: f32[2,8,32], index: 0, kind: input, shape index: {}]   ;;  %s4318_s1 = inlined_call_operand.hbm [shape: f32[2,4,8,8], index: 1, kind: input, shape index: {}]   ;;  %s4319_s2 = inlined_call_operand.vmem [shape: f32[1,32], index: 2, kind: input, shape index: {}]   ;;  %s4320_s3 = inlined_call_operand.vmem [shape: f32[1,32], index: 3, kind: input, shape index: {}]   ;;  %s4321_s4 = inlined_call_operand.hbm [shape: f32[32,96], index: 4, kind: input, shape index: {}]   ;;  %s4322_s5 = inlined_call_operand.vmem [shape: f32[1,96], index: 5, kind: input, shape index: {}]   ;;  %s4323_s6 = inlined_call_operand.hbm [shape: f32[32,32], index: 6, kind: input, shape index: {}]   ;;  %s4324_s7 = inlined_call_operand.vmem [shape: f32[1,32], index: 7, kind: input, shape index: {}]   ;;  %s4325_s8 = inlined_call_operand.hbm [shape: f32[32,96], index: 8, kind: input, shape index: {}]   ;;  %s4326_s9 = inlined_call_operand.vmem [shape: f32[1,96], index: 9, kind: input, shape index: {}]   ;;  %s4327_s10 = inlined_call_operand.hbm [shape: f32[32,64], index: 10, kind: input, shape index: {}]   ;;  %s4328_s11 = inlined_call_operand.hbm [shape: f32[32,32], index: 11, kind: input, shape index: {}]   ;;  %s4329_s12 = inlined_call_operand.hbm [shape: f32[2,8,32], index: 12, kind: output, shape index: {}]  }
   0x1   :  { %18 = vsyncpa [#allocation6], 0 }
   0x2   :  { %19 = vsyncpa [#allocation9], 0 }
   0x3   :  { %20 = vsyncpa [#allocation12], 0 }
   0x4   :  { %21 = vsyncpa [#allocation4], 0  ;;  %s3742_s21 = smov [#allocation5]   ;;  %s3743_s23 = smov [#allocation8]  }
   0x5   :  { %s39_s22 = sshll.u32 %s3742_s21, 4  ;;  %s69_s24 = sshll.u32 %s3743_s23, 4  ;;  %s40_s22 = int_to_ptr.vmem [resolvable:$true] %s39_s22  ;;  %s70_s24 = int_to_ptr.vmem [resolvable:$true] %s69_s24 }
   0x6   :  { %s3580_s25 = scalar_lea.vmem %s40_s22, 1024  ;;  %p3585_p1 = scmp.lt.s32.totalorder %s40_s22, %s40_s22 }
   0x7   :  { %p3581_p0 = scmp.ne.s32.totalorder %s40_s22, %s3580_s25  ;;  %p3586_p2 = scmp.lt.s32.totalorder %s3580_s25, %s3580_s25 }
   0x9   :  { %p3587_p3 = por %p3586_p2, %p3585_p1 }
   0xb   :  { %p3588_p4 = pnand %p3587_p3, %p3581_p0 }
   0xd   :  { %3591 = shalt.err (!%p3588_p4)
}
   0xe   :  { %s3744_s26 = smov 128   ;;  %s3745_s27 = smov 8  }
   0xf   :  { %45 = dma.hbm_to_vmem [thread:$0]  %s4318_s1, 1024, %s40_s22, [#allocation6], %s3744_s26, %s3744_s26, %s3745_s27  }
  0x10   :  { %s3600_s30 = scalar_lea.vmem %s70_s24, 512  ;;  %p3605_p6 = scmp.lt.s32.totalorder %s70_s24, %s70_s24 }
  0x11   :  { %p3601_p5 = scmp.ne.s32.totalorder %s70_s24, %s3600_s30  ;;  %p3606_p7 = scmp.lt.s32.totalorder %s3600_s30, %s3600_s30 }
  0x13   :  { %p3607_p8 = por %p3606_p7, %p3605_p6 }
  0x15   :  { %p3608_p9 = pnand %p3607_p8, %p3601_p5 }
  0x17   :  { %3611 = shalt.err (!%p3608_p9)
}
  0x18   :  { %75 = dma.hbm_to_vmem [thread:$0]  %s4323_s6, 512, %s70_s24, [#allocation9], %s3744_s26, %s3744_s26, %s3745_s27  }
  0x19   :  { %s3746_s15 = smov [#allocation11]   ;;  %s3747_s17 = smov [#allocation2]  }
  0x1a   :  { %s97_s16 = sshll.u32 %s3746_s15, 4  ;;  %s27_s18 = sshll.u32 %s3747_s17, 4  ;;  %s98_s16 = int_to_ptr.vmem [resolvable:$true] %s97_s16  ;;  %s28_s18 = int_to_ptr.vmem [resolvable:$true] %s27_s18 }
  0x1b   :  { %s3620_s1 = scalar_lea.vmem %s98_s16, 512  ;;  %p3625_p11 = scmp.lt.s32.totalorder %s98_s16, %s98_s16 }
  0x1c   :  { %p3621_p10 = scmp.ne.s32.totalorder %s98_s16, %s3620_s1  ;;  %p3626_p12 = scmp.lt.s32.totalorder %s3620_s1, %s3620_s1 }
  0x1e   :  { %p3627_p13 = por %p3626_p12, %p3625_p11 }
  0x20   :  { %p3628_p0 = pnand %p3627_p13, %p3621_p10 }
  0x22   :  { %3631 = shalt.err (!%p3628_p0)
}
  0x23   :  { %103 = dma.hbm_to_vmem [thread:$0]  %s4327_s10, 512, %s98_s16, [#allocation12], %s3744_s26, %s3744_s26, %s3745_s27  }
  0x24   :  { %s3640_s6 = scalar_lea.vmem %s28_s18, 256  ;;  %p3645_p2 = scmp.lt.s32.totalorder %s28_s18, %s28_s18 }
  0x25   :  { %p3641_p1 = scmp.ne.s32.totalorder %s28_s18, %s3640_s6  ;;  %p3646_p3 = scmp.lt.s32.totalorder %s3640_s6, %s3640_s6 }
  0x27   :  { %p3647_p4 = por %p3646_p3, %p3645_p2 }
  0x29   :  { %p3648_p5 = pnand %p3647_p4, %p3641_p1 }
  0x2b   :  { %3651 = shalt.err (!%p3648_p5)
}
  0x2c   :  { %33 = dma.hbm_to_vmem [thread:$0]  %s4317_s0, 256, %s28_s18, [#allocation3], %s3744_s26, %s3744_s26, %s3745_s27  }
  0x2d   :  { %s3748_s23 = smov [#allocation7]   ;;  %s3749_s25 = smov [#allocation10]  }
  0x2e   :  { %s55_s24 = sshll.u32 %s3748_s23, 4  ;;  %s83_s28 = sshll.u32 %s3749_s25, 4  ;;  %s56_s24 = int_to_ptr.vmem [resolvable:$true] %s55_s24  ;;  %s84_s28 = int_to_ptr.vmem [resolvable:$true] %s83_s28 }
  0x2f   :  { %s3660_s10 = scalar_lea.vmem %s56_s24, 512  ;;  %p3665_p7 = scmp.lt.s32.totalorder %s56_s24, %s56_s24 }
  0x30   :  { %p3661_p6 = scmp.ne.s32.totalorder %s56_s24, %s3660_s10  ;;  %p3666_p8 = scmp.lt.s32.totalorder %s3660_s10, %s3660_s10 }
  0x32   :  { %p3667_p9 = por %p3666_p8, %p3665_p7 }
  0x34   :  { %p3668_p10 = pnand %p3667_p9, %p3661_p6 }
  0x36   :  { %3671 = shalt.err (!%p3668_p10)
}
  0x37   :  { %61 = dma.hbm_to_vmem [thread:$0]  %s4321_s4, 512, %s56_s24, [#allocation6], %s3744_s26, %s3744_s26, %s3745_s27  }
  0x38   :  { %s3680_s0 = scalar_lea.vmem %s84_s28, 512  ;;  %p3685_p12 = scmp.lt.s32.totalorder %s84_s28, %s84_s28 }
  0x39   :  { %p3681_p11 = scmp.ne.s32.totalorder %s84_s28, %s3680_s0  ;;  %p3686_p13 = scmp.lt.s32.totalorder %s3680_s0, %s3680_s0 }
  0x3b   :  { %p3687_p0 = por %p3686_p13, %p3685_p12 }
  0x3d   :  { %p3688_p1 = pnand %p3687_p0, %p3681_p11 }
  0x3f   :  { %3691 = shalt.err (!%p3688_p1)
}
  0x40   :  { %89 = dma.hbm_to_vmem [thread:$0]  %s4325_s8, 512, %s84_s28, [#allocation9], %s3744_s26, %s3744_s26, %s3745_s27  }
  0x41   :  { %s3750_s15 = smov [#allocation13]  }
  0x42   :  { %s109_s16 = sshll.u32 %s3750_s15, 4  ;;  %s110_s16 = int_to_ptr.vmem [resolvable:$true] %s109_s16 }
  0x43   :  { %s3700_s17 = scalar_lea.vmem %s110_s16, 512  ;;  %p3705_p3 = scmp.lt.s32.totalorder %s110_s16, %s110_s16 }
  0x44   :  { %p3701_p2 = scmp.ne.s32.totalorder %s110_s16, %s3700_s17  ;;  %p3706_p4 = scmp.lt.s32.totalorder %s3700_s17, %s3700_s17 }
  0x46   :  { %p3707_p5 = por %p3706_p4, %p3705_p3 }
  0x48   :  { %p3708_p6 = pnand %p3707_p5, %p3701_p2 }
  0x4a   :  { %3711 = shalt.err (!%p3708_p6)
}
  0x4b   :  { %115 = dma.hbm_to_vmem [thread:$0]  %s4328_s11, 512, %s110_s16, [#allocation12], %s3744_s26, %s3744_s26, %s3745_s27  }
  0x4c   :  { %3732 = dma.done.wait [#allocation3], 256  }
  0x4d   :  { %3733 = vsyncadd [#allocation3], 4294967040 }
  0x4e   :  { %3734 = dma.done.wait [#allocation6], 1536  }
  0x4f   :  { %3735 = vsyncadd [#allocation6], 4294965760 }
  0x50   :  { %3736 = dma.done.wait [#allocation9], 1024  }
  0x51   :  { %3737 = vsyncadd [#allocation9], 4294966272 }
  0x52   :  { %3738 = dma.done.wait [#allocation12], 1024  }
  0x53   :  { %3739 = vsyncadd [#allocation12], 4294966272  ;;  %vm139_vm0 = vcmask 261120   ;;  %v137_v0 = vld [vmem:[#allocation2] sm:$0xff]  ;;  %v138_v1 = vld [vmem:[#allocation2 + $0x8] sm:$0xff]  ;;  %s3753_s21 = smov 104   ;;  %v318_v58 = vlaneseq }
  0x54   :  { %v140_v2 = vsel %vm139_vm0, %v137_v0, 0.0  ;;  %v143_v3 = vsel %vm139_vm0, %v138_v1, 0.0  ;;  %v204_v14 = vld [vmem:[#allocation7 + $0x18] sm:$0xff]  ;;  %v203_v15 = vld [vmem:[#allocation7 + $0x10] sm:$0xff]  ;;  %v202_v16 = vld [vmem:[#allocation7 + $0x8] sm:$0xff]  ;;  %s3754_s22 = smov 96  }
  0x55   :  { %141 = vadd.xlane.f32.xlu0 %v140_v2  ;;  %3361 = vmatprep.subr.mxu0 %v204_v14  ;;  %v201_v17 = vld [vmem:[#allocation7] sm:$0xff]  ;;  %v3242_v35 = vld [vmem:[%s4319_s2] ss:$0 sm:$0xff]  ;;  %s3751_s2 = smov 112   ;;  %v3755_v54 = vmov 0.0   ;;  %vm3756_vm5 = vmmov 0  }
  0x56   :  { %3362 = vmatpush3.msra.mxu0 %v204_v14  ;;  %v3243_v37 = vld [vmem:[%s4320_s3] ss:$0 sm:$0xff]  ;;  %s3752_s3 = smov 120   ;;  %3372 = vmatprep.subr.mxu1 %v3755_v54  ;;  %v3757_v56 = vmov 1983009808   ;;  %v319_v60 = vshrl.u32 %v318_v58, 7 }
  0x57   :  { %3363 = vmatprep.subr.mxu0 %v203_v15  ;;  %v3244_v45 = vld [vmem:[%s4322_s5] ss:$0 sm:$0xff]  ;;  %3374 = vmatprep.mubr.msk.f32.mxu1 %vm3756_vm5, %v3755_v54  ;;  %v316_v57 = vunpack.c.l.s4 %v3757_v56  ;;  %v3758_v61 = vmov 1934713408   ;;  %vm1201_vm6 = vcmask 64512   ;;  %s3759_s5 = smov 64  }
  0x58   :  { %3364 = vmatpush3.msra.mxu0 %v203_v15  ;;  %v348_v62 = vunpack.c.l.s4 %v3758_v61  ;;  %s3760_s23 = smov 16   ;;  %s3761_s24 = smov 24   ;;  %vm2804_vm15 = vcmask 130048  }
  0x59   :  { %144 = vadd.xlane.f32.xlu0 %v143_v3  ;;  %3365 = vmatprep.subr.mxu0 %v202_v16  ;;  %v317_v59 = vunpack.c.0.s8 %v316_v57  ;;  %s3762_s25 = smov 32  }
  0x5a   :  { %3366 = vmatpush3.msra.mxu0 %v202_v16 }
  0x5b   :  { %3367 = vmatprep.subr.mxu0 %v201_v17 }
  0x5c   :  { %3368 = vmatpush3.msra.mxu0 %v201_v17 }
  0x5d   :  { %3382 = vmatprep.subr.mxu0 %v3755_v54 }
  0xde   :  { %v142_v4 = vpop.xlane.xlu0 %141 }
  0xdf   :  { %v147_v5 = vmul.f32 0.03125, %v142_v4  ;;  %v349_v4 = vunpack.c.0.s8 %v348_v62 }
  0xe1   :  { %v149_v6 = vsub.f32 %v137_v0, %v147_v5  ;;  %v3932_v0 = vsub.s32 %v317_v59, %v319_v60 }
  0xe2   :  { %v145_v7 = vpop.xlane.xlu0 %144 }
  0xe3   :  { %v148_v8 = vmul.f32 0.03125, %v145_v7  ;;  %v151_v9 = vmul.f32 %v149_v6, %v149_v6 }
  0xe5   :  { %v150_v10 = vsub.f32 %v138_v1, %v148_v8  ;;  %v153_v11 = vsel %vm139_vm0, %v151_v9, 0.0  ;;  %v3944_v9 = vsub.s32 %v349_v4, %v319_v60 }
  0xe6   :  { %154 = vadd.xlane.f32.xlu1 %v153_v11 }
  0xe7   :  { %v152_v12 = vmul.f32 %v150_v10, %v150_v10 }
  0xe9   :  { %v156_v13 = vsel %vm139_vm0, %v152_v12, 0.0 }
  0xea   :  { %157 = vadd.xlane.f32.xlu1 %v156_v13 }
 0x16f   :  { %v155_v18 = vpop.xlane.xlu1 %154 }
 0x170   :  { %v159_v19 = vmul.f32 0.03125, %v155_v18 }
 0x172   :  { %v161_v20 = vadd.f32 1e-05, %v159_v19 }
 0x173   :  { %v158_v21 = vpop.xlane.xlu1 %157 }
 0x174   :  { %3518 = vrsqrt.f32 %v161_v20  ;;  %v160_v22 = vmul.f32 0.03125, %v158_v21  ;;  %vm165_vm1 = vcmp.eq.f32.partialorder %v161_v20, inf  ;;  %v168_v26 = vand.u32 2147483648, %v161_v20 }
 0x175   :  { %vm167_vm2 = vcmp.eq.f32.partialorder %v161_v20, 0.0 }
 0x176   :  { %v162_v23 = vadd.f32 1e-05, %v160_v22 }
 0x178   :  { %3520 = vrsqrt.f32 %v162_v23  ;;  %vm172_vm3 = vcmp.eq.f32.partialorder %v162_v23, inf  ;;  %v175_v31 = vand.u32 2147483648, %v162_v23  ;;  %vm174_vm4 = vcmp.eq.f32.partialorder %v162_v23, 0.0 }
 0x181   :  { %v3519_v24 = vpop.eup %3518 }
 0x182   :  { %v164_v25 = vmul.f32 %v3519_v24, %v161_v20 }
 0x184   :  { %v166_v27 = vsel %vm165_vm1, %v161_v20, %v164_v25  ;;  %vm2807_vm1 = vcmask 195584  }
 0x185   :  { %v169_v28 = vsel %vm167_vm2, %v168_v26, %v166_v27  ;;  %v3521_v29 = vpop.eup %3520 }
 0x186   :  { %3522 = vrcp.f32 %v169_v28  ;;  %v171_v30 = vmul.f32 %v3521_v29, %v162_v23 }
 0x188   :  { %v173_v32 = vsel %vm172_vm3, %v162_v23, %v171_v30 }
 0x189   :  { %v176_v33 = vsel %vm174_vm4, %v175_v31, %v173_v32 }
 0x18a   :  { %3524 = vrcp.f32 %v176_v33 }
 0x193   :  { %v3523_v34 = vpop.eup %3522 }
 0x194   :  { %v181_v36 = vmul.f32 %v3523_v34, %v149_v6 }
 0x196   :  { %v190_v38 = vmul.f32 %v3242_v35, %v181_v36 }
 0x197   :  { %v3525_v39 = vpop.eup %3524 }
 0x198   :  { %v199_v40 = vadd.f32 %v3243_v37, %v190_v38  ;;  %v182_v41 = vmul.f32 %v3525_v39, %v150_v10 }
 0x19a   :  { %3369 = vmatprep.mubr.msk.f32.mxu0 %vm139_vm0, %v199_v40  ;;  %v191_v42 = vmul.f32 %v3242_v35, %v182_v41 }
 0x19c   :  { %v200_v43 = vadd.f32 %v3243_v37, %v191_v42 }
 0x19e   :  { %3370 = vmatmul.mubr.msk.f32.vlgmr.msra.gmra.mxu0 %vm139_vm0, %v200_v43 }
 0x19f   :  { %3384 = vmatprep.mubr.msk.f32.mxu0 %vm3756_vm5, %v3755_v54 }
 0x25e   :  { %v3371_v44 = vpop.f32.mrf.mxu0 }
 0x25f   :  { %v3890_v48 = vadd.f32 %v3371_v44, %v3244_v45 }
 0x260   :  { %v284_v46 = vpop.f32.mrf.mxu0 }
 0x261   :  { %v3886_v47 = vadd.f32 %v3244_v45, %v284_v46 }
 0x263   :  { %301 = vrot.lane.b32.xlu1 %v3886_v47, %s3751_s2  ;;  %295 = vrot.lane.b32.xlu0 %v3886_v47, %s3752_s3 }
 0x267   :  { %307 = vrot.lane.b32.xlu1 %v3886_v47, %s3753_s21  ;;  %303 = vrot.lane.b32.xlu0 %v3890_v48, %s3751_s2 }
 0x26b   :  { %297 = vrot.lane.b32.xlu1 %v3890_v48, %s3752_s3  ;;  %585 = vrot.lane.b32.xlu0 %v3886_v47, %s3754_s22 }
 0x26f   :  { %309 = vrot.lane.b32.xlu1 %v3890_v48, %s3753_s21 }
 0x2d5   :  { %v3898_v49 = vpop.permute.xlu1 %301  ;;  %v3900_v50 = vpop.permute.xlu0 %295 }
 0x2d6   :  { %593 = vrot.lane.b32.xlu0 %v3898_v49, %s3754_s22  ;;  %589 = vrot.lane.b32.xlu1 %v3900_v50, %s3754_s22  ;;  %v313_v1 = vcombine.low %v3886_v47, %v3898_v49  ;;  %v314_v3 = vcombine.high %v3886_v47, %v3898_v49 }
 0x2d8   :  { %v321_v6 = vrot.slane %v313_v1, %v3932_v0  ;;  %v328_v8 = vrot.slane %v314_v3, %v3932_v0 }
 0x2d9   :  { %v3906_v51 = vpop.permute.xlu1 %307  ;;  %v3912_v52 = vpop.permute.xlu0 %303 }
 0x2da   :  { %587 = vrot.lane.b32.xlu0 %v3890_v48, %s3754_s22  ;;  %597 = vrot.lane.b32.xlu1 %v3906_v51, %s3754_s22  ;;  %v329_v63 = vcombine.low %v3900_v50, %v3906_v51  ;;  %v330_v2 = vcombine.high %v3900_v50, %v3906_v51  ;;  %v381_v22 = vcombine.low %v3890_v48, %v3912_v52 }
 0x2db   :  { %v382_v24 = vcombine.high %v3890_v48, %v3912_v52 }
 0x2dc   :  { %v337_v5 = vrot.slane %v329_v63, %v3932_v0  ;;  %v344_v7 = vrot.slane %v330_v2, %v3932_v0  ;;  %v389_v30 = vrot.slane %v381_v22, %v3932_v0 }
 0x2dd   :  { %v3914_v53 = vpop.permute.xlu1 %297  ;;  %v586_v19 = vpop.permute.xlu0 %585  ;;  %v396_v34 = vrot.slane %v382_v24, %v3932_v0 }
 0x2de   :  { %595 = vrot.lane.b32.xlu0 %v3912_v52, %s3754_s22  ;;  %591 = vrot.lane.b32.xlu1 %v3914_v53, %s3754_s22  ;;  %v345_v10 = vcombine.low %v321_v6, %v337_v5  ;;  %v346_v11 = vcombine.high %v321_v6, %v337_v5  ;;  %v361_v12 = vcombine.low %v328_v8, %v344_v7 }
 0x2df   :  { %v362_v13 = vcombine.high %v328_v8, %v344_v7 }
 0x2e0   :  { %v353_v14 = vrot.slane %v345_v10, %v3944_v9  ;;  %v360_v15 = vrot.slane %v346_v11, %v3944_v9  ;;  %v369_v16 = vrot.slane %v361_v12, %v3944_v9 }
 0x2e1   :  { %v3921_v55 = vpop.permute.xlu1 %309  ;;  %v376_v17 = vrot.slane %v362_v13, %v3944_v9 }
 0x2e2   :  { %599 = vrot.lane.b32.xlu1 %v3921_v55, %s3754_s22  ;;  %v397_v18 = vcombine.low %v3914_v53, %v3921_v55  ;;  %v449_v20 = vcombine.low %v353_v14, %v360_v15  ;;  %v3247_v21 = vcombine.high %v353_v14, %v360_v15  ;;  %v398_v23 = vcombine.high %v3914_v53, %v3921_v55 }
 0x2e3   :  { %v465_v25 = vcombine.low %v369_v16, %v376_v17  ;;  %v3248_v26 = vcombine.high %v369_v16, %v376_v17 }
 0x2e4   :  { %v405_v27 = vrot.slane %v397_v18, %v3932_v0  ;;  %v412_v31 = vrot.slane %v398_v23, %v3932_v0  ;;  %v456_v32 = vrot.slane %v449_v20, %v3932_v0  ;;  %v464_v33 = vrot.slane %v3247_v21, %v3932_v0 }
 0x2e5   :  { %v472_v37 = vrot.slane %v465_v25, %v3932_v0  ;;  %v480_v38 = vrot.slane %v3248_v26, %v3932_v0 }
 0x2e6   :  { %v413_v35 = vcombine.low %v389_v30, %v405_v27  ;;  %v414_v36 = vcombine.high %v389_v30, %v405_v27  ;;  %v429_v42 = vcombine.low %v396_v34, %v412_v31  ;;  %v430_v43 = vcombine.high %v396_v34, %v412_v31 }
 0x2e7   :  { %v481_v45 = vcombine.low %v456_v32, %v464_v33  ;;  %v482_v46 = vcombine.high %v456_v32, %v464_v33  ;;  %v497_v60 = vcombine.low %v472_v37, %v480_v38  ;;  %v498_v61 = vcombine.high %v472_v37, %v480_v38 }
 0x2e8   :  { %v421_v58 = vrot.slane %v413_v35, %v3944_v9  ;;  %v428_v59 = vrot.slane %v414_v36, %v3944_v9  ;;  %v437_v3 = vrot.slane %v429_v42, %v3944_v9  ;;  %v444_v4 = vrot.slane %v430_v43, %v3944_v9 }
 0x2e9   :  { %v3975_v6 = vrot.slane %v481_v45, %v3944_v9  ;;  %v3978_v7 = vrot.slane %v482_v46, %v3944_v9  ;;  %v3981_v16 = vrot.slane %v497_v60, %v3944_v9  ;;  %v3984_v17 = vrot.slane %v498_v61, %v3944_v9 }
 0x2ea   :  { %v517_v14 = vcombine.low %v421_v58, %v428_v59  ;;  %v3249_v15 = vcombine.high %v421_v58, %v428_v59  ;;  %v533_v22 = vcombine.low %v437_v3, %v444_v4  ;;  %v3250_v23 = vcombine.high %v437_v3, %v444_v4 }
 0x2ec   :  { %v3991_v31 = vrot.slane %v517_v14, %v3932_v0  ;;  %v3994_v32 = vrot.slane %v3249_v15, %v3932_v0 }
 0x348   :  { %v590_v28 = vpop.permute.xlu1 %589  ;;  %v594_v29 = vpop.permute.xlu0 %593 }
 0x349   :  { %v609_v39 = vcombine.low %v586_v19, %v594_v29  ;;  %v610_v40 = vcombine.high %v586_v19, %v594_v29 }
 0x34b   :  { %v617_v62 = vrot.slane %v609_v39, %v3932_v0  ;;  %v624_v63 = vrot.slane %v610_v40, %v3932_v0 }
 0x34c   :  { %v588_v41 = vpop.permute.xlu0 %587  ;;  %v598_v44 = vpop.permute.xlu1 %597 }
 0x34d   :  { %v625_v56 = vcombine.low %v590_v28, %v598_v44  ;;  %v626_v57 = vcombine.high %v590_v28, %v598_v44 }
 0x34f   :  { %v633_v1 = vrot.slane %v625_v56, %v3932_v0  ;;  %v640_v2 = vrot.slane %v626_v57, %v3932_v0 }
 0x350   :  { %v592_v5 = vpop.permute.xlu1 %591  ;;  %v596_v13 = vpop.permute.xlu0 %595 }
 0x351   :  { %v641_v8 = vcombine.low %v617_v62, %v633_v1  ;;  %v642_v10 = vcombine.high %v617_v62, %v633_v1  ;;  %v657_v11 = vcombine.low %v624_v63, %v640_v2  ;;  %v658_v12 = vcombine.high %v624_v63, %v640_v2 }
 0x352   :  { %v677_v24 = vcombine.low %v588_v41, %v596_v13  ;;  %v678_v25 = vcombine.high %v588_v41, %v596_v13 }
 0x353   :  { %v649_v18 = vrot.slane %v641_v8, %v3944_v9  ;;  %v656_v19 = vrot.slane %v642_v10, %v3944_v9  ;;  %v665_v20 = vrot.slane %v657_v11, %v3944_v9  ;;  %v672_v21 = vrot.slane %v658_v12, %v3944_v9 }
 0x354   :  { %v600_v26 = vpop.permute.xlu1 %599  ;;  %v685_v39 = vrot.slane %v677_v24, %v3932_v0  ;;  %v692_v40 = vrot.slane %v678_v25, %v3932_v0  ;;  %v548_v8 = vrot.slane %v3250_v23, %v3932_v0  ;;  %v515_v24 = vcombine.low %v3978_v7, %v3984_v17 }
 0x355   :  { %v745_v27 = vcombine.low %v649_v18, %v656_v19  ;;  %v3251_v28 = vcombine.high %v649_v18, %v656_v19  ;;  %v761_v29 = vcombine.low %v665_v20, %v672_v21  ;;  %v3252_v30 = vcombine.high %v665_v20, %v672_v21 }
 0x356   :  { %v693_v33 = vcombine.low %v592_v5, %v600_v26  ;;  %v694_v34 = vcombine.high %v592_v5, %v600_v26  ;;  %v540_v5 = vrot.slane %v533_v22, %v3932_v0  ;;  %v513_v18 = vcombine.low %v3975_v6, %v3981_v16 }
 0x357   :  { %v752_v35 = vrot.slane %v745_v27, %v3932_v0  ;;  %v760_v36 = vrot.slane %v3251_v28, %v3932_v0  ;;  %v768_v37 = vrot.slane %v761_v29, %v3932_v0  ;;  %v776_v38 = vrot.slane %v3252_v30, %v3932_v0 }
 0x358   :  { %v701_v41 = vrot.slane %v693_v33, %v3932_v0  ;;  %v708_v42 = vrot.slane %v694_v34, %v3932_v0  ;;  %v549_v25 = vcombine.low %v3991_v31, %v3994_v32  ;;  %v565_v26 = vcombine.low %v540_v5, %v548_v8 }
 0x359   :  { %v777_v43 = vcombine.low %v752_v35, %v760_v36  ;;  %v778_v44 = vcombine.high %v752_v35, %v760_v36  ;;  %v793_v45 = vcombine.low %v768_v37, %v776_v38  ;;  %v794_v46 = vcombine.high %v768_v37, %v776_v38 }
 0x35a   :  { %v709_v56 = vcombine.low %v685_v39, %v701_v41  ;;  %v710_v57 = vcombine.high %v685_v39, %v701_v41  ;;  %v725_v58 = vcombine.low %v692_v40, %v708_v42  ;;  %v726_v59 = vcombine.high %v692_v40, %v708_v42 }
 0x35b   :  { %v785_v60 = vrot.slane %v777_v43, %v3944_v9  ;;  %v801_v61 = vrot.slane %v793_v45, %v3944_v9  ;;  %v792_v62 = vrot.slane %v778_v44, %v3944_v9  ;;  %v808_v63 = vrot.slane %v794_v46, %v3944_v9 }
 0x35c   :  { %v717_v1 = vrot.slane %v709_v56, %v3944_v9  ;;  %v724_v2 = vrot.slane %v710_v57, %v3944_v9  ;;  %v733_v3 = vrot.slane %v725_v58, %v3944_v9  ;;  %v740_v4 = vrot.slane %v726_v59, %v3944_v9  ;;  %v1177_v57 = vld [vmem:[#allocation5] sm:$0xff]  ;;  %v1179_v58 = vld [vmem:[#allocation5 + $0x10] sm:$0xff]  ;;  %v1178_v59 = vld [vmem:[#allocation5 + $0x8] sm:$0xff] }
 0x35d   :  { %v809_v10 = vcombine.low %v785_v60, %v801_v61  ;;  %v811_v11 = vcombine.low %v792_v62, %v808_v63  ;;  %v810_v23 = vcombine.high %v785_v60, %v801_v61  ;;  %v514_v33 = vcombine.high %v3975_v6, %v3981_v16 }
 0x35e   :  { %v813_v12 = vcombine.low %v717_v1, %v724_v2  ;;  %v3253_v13 = vcombine.high %v717_v1, %v724_v2  ;;  %v829_v14 = vcombine.low %v733_v3, %v740_v4  ;;  %v3254_v15 = vcombine.high %v733_v3, %v740_v4 }
 0x35f   :  { %3373 = vmatpush3.xpose.msk.msra.mxu1 %vm1201_vm6, %v809_v10  ;;  %3383 = vmatpush3.xpose.msk.msra.mxu0 %vm1201_vm6, %v811_v11  ;;  %v550_v36 = vcombine.high %v3991_v31, %v3994_v32  ;;  %v812_v37 = vcombine.high %v792_v62, %v808_v63  ;;  %v557_v6 = vrot.slane %v549_v25, %v3944_v9  ;;  %vm1185_vm7 = vcmp.eq.f32.partialorder %v1177_v57, 0.0 }
 0x360   :  { %v820_v19 = vrot.slane %v813_v12, %v3932_v0  ;;  %v828_v20 = vrot.slane %v3253_v13, %v3932_v0  ;;  %v836_v21 = vrot.slane %v829_v14, %v3932_v0  ;;  %v844_v22 = vrot.slane %v3254_v15, %v3932_v0  ;;  %3377 = vmatprep.subr.mxu1 %v3755_v54  ;;  %v1180_v15 = vld [vmem:[#allocation5 + $0x18] sm:$0xff] }
 0x361   :  { %3392 = vmatprep.subr.mxu0 %v3755_v54  ;;  %v573_v16 = vrot.slane %v565_v26, %v3944_v9  ;;  %v566_v38 = vcombine.high %v540_v5, %v548_v8  ;;  %v516_v31 = vcombine.high %v3978_v7, %v3984_v17  ;;  %v564_v43 = vrot.slane %v550_v36, %v3944_v9  ;;  %v1181_v8 = vld [vmem:[#allocation5 + $0x20] sm:$0xff] }
 0x362   :  { %v845_v27 = vcombine.low %v820_v19, %v828_v20  ;;  %v846_v28 = vcombine.high %v820_v19, %v828_v20  ;;  %v861_v29 = vcombine.low %v836_v21, %v844_v22  ;;  %v862_v30 = vcombine.high %v836_v21, %v844_v22  ;;  %3375 = vmatmul.mubr.msk.f32.vlgmr.msra.gmra.mxu1 %vm1201_vm6, %v513_v18 }
 0x363   :  { %3385 = vmatmul.mubr.msk.f32.vlgmr.msra.gmra.mxu0 %vm1201_vm6, %v515_v24  ;;  %3378 = vmatpush3.xpose.msk.msra.mxu1 %vm1201_vm6, %v810_v23  ;;  %v581_v32 = vcombine.low %v557_v6, %v573_v16  ;;  %v580_v44 = vrot.slane %v566_v38, %v3944_v9  ;;  %v582_v7 = vcombine.high %v557_v6, %v573_v16  ;;  %vm1187_vm8 = vcmp.eq.f32.partialorder %v1179_v58, 0.0 }
 0x364   :  { %3379 = vmatprep.mubr.msk.f32.mxu1 %vm3756_vm5, %v3755_v54  ;;  %3387 = vmatprep.subr.mxu1 %v3755_v54  ;;  %v853_v34 = vrot.slane %v845_v27, %v3944_v9  ;;  %v869_v35 = vrot.slane %v861_v29, %v3944_v9  ;;  %v860_v40 = vrot.slane %v846_v28, %v3944_v9  ;;  %v1193_v61 = vsel %vm1185_vm7, -1e+30, %v3755_v54 }
 0x365   :  { %3394 = vmatprep.mubr.msk.f32.mxu0 %vm3756_vm5, %v3755_v54  ;;  %v876_v41 = vrot.slane %v862_v30, %v3944_v9  ;;  %v583_v17 = vcombine.low %v564_v43, %v580_v44  ;;  %v584_v56 = vcombine.high %v564_v43, %v580_v44  ;;  %vm1186_vm9 = vcmp.eq.f32.partialorder %v1178_v59, 0.0 }
 0x366   :  { %3380 = vmatmul.mubr.msk.f32.vlgmr.msra.gmra.mxu1 %vm1201_vm6, %v514_v33  ;;  %v877_v39 = vcombine.low %v853_v34, %v869_v35  ;;  %v878_v42 = vcombine.high %v853_v34, %v869_v35  ;;  %v1195_v3 = vsel %vm1187_vm8, -1e+30, %v3755_v54  ;;  %v1194_v11 = vsel %vm1186_vm9, -1e+30, %v3755_v54 }
 0x367   :  { %3388 = vmatpush3.xpose.msk.msra.mxu1 %vm1201_vm6, %v812_v37  ;;  %3389 = vmatprep.mubr.msk.f32.mxu1 %vm3756_vm5, %v3755_v54  ;;  %v879_v45 = vcombine.low %v860_v40, %v876_v41  ;;  %v880_v46 = vcombine.high %v860_v40, %v876_v41  ;;  %vm1189_vm10 = vcmp.eq.f32.partialorder %v1181_v8, 0.0  ;;  %vm1188_vm11 = vcmp.eq.f32.partialorder %v1180_v15, 0.0  ;;  %v1182_v40 = vld [vmem:[#allocation5 + $0x28] sm:$0xff]  ;;  %v1183_v41 = vld [vmem:[#allocation5 + $0x30] sm:$0xff] }
 0x368   :  { %3393 = vmatpush3.xpose.msk.msra.mxu0 %vm1201_vm6, %v877_v39  ;;  %3397 = vmatprep.subr.mxu1 %v3755_v54  ;;  %v1197_v24 = vsel %vm1189_vm10, -1e+30, %v3755_v54  ;;  %v1196_v29 = vsel %vm1188_vm11, -1e+30, %v3755_v54  ;;  %vm1190_vm12 = vcmp.eq.f32.partialorder %v1182_v40, 0.0  ;;  %vm1191_vm13 = vcmp.eq.f32.partialorder %v1183_v41, 0.0 }
 0x369   :  { %3402 = vmatprep.subr.mxu0 %v3755_v54  ;;  %v1198_v43 = vsel %vm1190_vm12, -1e+30, %v3755_v54 }
 0x36a   :  { %3390 = vmatmul.mubr.msk.f32.vlgmr.msra.gmra.mxu1 %vm1201_vm6, %v516_v31  ;;  %v1184_v31 = vld [vmem:[#allocation5 + $0x38] sm:$0xff] }
 0x36b   :  { %3395 = vmatmul.mubr.msk.f32.vlgmr.msra.gmra.mxu0 %vm1201_vm6, %v581_v32  ;;  %3398 = vmatpush3.xpose.msk.msra.mxu1 %vm1201_vm6, %v878_v42  ;;  %vm1192_vm14 = vcmp.eq.f32.partialorder %v1184_v31, 0.0 }
 0x36c   :  { %3403 = vmatpush3.xpose.msk.msra.mxu0 %vm1201_vm6, %v879_v45  ;;  %3399 = vmatprep.mubr.msk.f32.mxu1 %vm3756_vm5, %v3755_v54 }
 0x36d   :  { %3404 = vmatprep.mubr.msk.f32.mxu0 %vm3756_vm5, %v3755_v54  ;;  %3407 = vmatprep.subr.mxu1 %v3755_v54 }
 0x36e   :  { %3400 = vmatmul.mubr.msk.f32.vlgmr.msra.gmra.mxu1 %vm1201_vm6, %v582_v7  ;;  %3412 = vmatprep.subr.mxu0 %v3755_v54 }
 0x36f   :  { %3405 = vmatmul.mubr.msk.f32.vlgmr.msra.gmra.mxu0 %vm1201_vm6, %v583_v17  ;;  %3408 = vmatpush3.xpose.msk.msra.mxu1 %vm1201_vm6, %v880_v46 }
 0x370   :  { %3409 = vmatprep.mubr.msk.f32.mxu1 %vm3756_vm5, %v3755_v54  ;;  %3417 = vmatprep.subr.mxu1 %v3755_v54 }
 0x371   :  { %3414 = vmatprep.mubr.msk.f32.mxu0 %vm3756_vm5, %v3755_v54 }
 0x372   :  { %3410 = vmatmul.mubr.msk.f32.vlgmr.msra.gmra.mxu1 %vm1201_vm6, %v584_v56 }
 0x373   :  { %3419 = vmatprep.mubr.msk.f32.mxu1 %vm3756_vm5, %v3755_v54 }
 0x422   :  { %v1274_v60 = vpop.f32.mrf.mxu1 }
 0x423   :  { %v1810_v62 = vmul.f32 0.35355338, %v1274_v60  ;;  %v1426_v63 = vpop.f32.mrf.mxu0 }
 0x424   :  { %v1812_v1 = vmul.f32 0.35355338, %v1426_v63  ;;  %v3376_v2 = vpop.f32.mrf.mxu1 }
 0x425   :  { %v3386_v4 = vpop.f32.mrf.mxu0  ;;  %v4080_v5 = vadd.f32 %v1810_v62, %v1193_v61 }
 0x426   :  { %v1350_v10 = vpop.f32.mrf.mxu1  ;;  %v4085_v14 = vadd.f32 %v1812_v1, %v1195_v3 }
 0x427   :  { %v1811_v12 = vmul.f32 0.35355338, %v1350_v10  ;;  %v1826_v13 = vsel %vm1201_vm6, %v4080_v5, -inf }
 0x428   :  { %1827 = vmax.xlane.f32.xlu0 %v1826_v13  ;;  %v3381_v18 = vpop.f32.mrf.mxu1  ;;  %v1832_v22 = vsel %vm1201_vm6, %v4085_v14, -inf }
 0x429   :  { %v1819_v19 = vadd.f32 %v1811_v12, %v1194_v11 }
 0x42a   :  { %v1502_v20 = vpop.f32.mrf.mxu1 }
 0x42b   :  { %v1578_v21 = vpop.f32.mrf.mxu0  ;;  %v1829_v23 = vsel %vm1201_vm6, %v1819_v19, -inf  ;;  %v1813_v25 = vmul.f32 0.35355338, %v1502_v20 }
 0x42c   :  { %v1814_v26 = vmul.f32 0.35355338, %v1578_v21  ;;  %1833 = vmax.xlane.f32.xlu0 %v1832_v22  ;;  %1830 = vmax.xlane.f32.xlu1 %v1829_v23  ;;  %v3391_v27 = vpop.f32.mrf.mxu1 }
 0x42d   :  { %v3396_v28 = vpop.f32.mrf.mxu0  ;;  %v1821_v37 = vadd.f32 %v1813_v25, %v1196_v29 }
 0x42e   :  { %v1654_v30 = vpop.f32.mrf.mxu1  ;;  %v1822_v33 = vadd.f32 %v1814_v26, %v1197_v24 }
 0x42f   :  { %v1730_v34 = vpop.f32.mrf.mxu0  ;;  %v1835_v39 = vsel %vm1201_vm6, %v1821_v37, -inf  ;;  %v1815_v32 = vmul.f32 0.35355338, %v1654_v30 }
 0x430   :  { %v3401_v35 = vpop.f32.mrf.mxu1  ;;  %v1838_v36 = vsel %vm1201_vm6, %v1822_v33, -inf  ;;  %v1816_v42 = vmul.f32 0.35355338, %v1730_v34 }
 0x431   :  { %1839 = vmax.xlane.f32.xlu0 %v1838_v36  ;;  %v3406_v6 = vpop.f32.mrf.mxu0 }
 0x432   :  { %v1806_v16 = vpop.f32.mrf.mxu1 }
 0x433   :  { %v1817_v44 = vmul.f32 0.35355338, %v1806_v16 }
 0x434   :  { %v3411_v38 = vpop.f32.mrf.mxu1 }
 0x435   :  { %1836 = vmax.xlane.f32.xlu0 %v1835_v39 }
 0x43d   :  { %885 = vrot.lane.b32.xlu1 %v3900_v50, %s3759_s5  ;;  %v1199_v50 = vsel %vm1191_vm13, -1e+30, %v3755_v54 }
 0x43e   :  { %v4106_v45 = vadd.f32 %v1816_v42, %v1199_v50 }
 0x440   :  { %v1844_v17 = vsel %vm1201_vm6, %v4106_v45, -inf }
 0x441   :  { %889 = vrot.lane.b32.xlu1 %v3898_v49, %s3759_s5  ;;  %v4104_v49 = vadd.f32 %v1815_v32, %v1198_v43 }
 0x445   :  { %893 = vrot.lane.b32.xlu1 %v3906_v51, %s3759_s5  ;;  %v1200_v51 = vsel %vm1192_vm14, -1e+30, %v3755_v54 }
 0x446   :  { %v4111_v7 = vadd.f32 %v1817_v44, %v1200_v51 }
 0x448   :  { %v1847_v46 = vsel %vm1201_vm6, %v4111_v7, -inf }
 0x44b   :  { %881 = vrot.lane.b32.xlu0 %v3886_v47, %s3759_s5  ;;  %v1841_v47 = vsel %vm1201_vm6, %v4104_v49, -inf }
 0x469   :  { %1842 = vmax.xlane.f32.xlu1 %v1841_v47 }
 0x46a   :  { %1845 = vmax.xlane.f32.xlu0 %v1844_v17 }
 0x46d   :  { %1848 = vmax.xlane.f32.xlu1 %v1847_v46 }
 0x47e   :  { %887 = vrot.lane.b32.xlu1 %v3914_v53, %s3759_s5 }
 0x480   :  { %883 = vrot.lane.b32.xlu0 %v3890_v48, %s3759_s5 }
 0x4b1   :  { %v1828_v56 = vpop.xlane.xlu0 %1827 }
 0x4b2   :  { %v1850_v57 = vsub.f32 %v4080_v5, %v1828_v56 }
 0x4b4   :  { %v1858_v58 = vmul.f32 1.442695, %v1850_v57 }
 0x4b5   :  { %v1831_v59 = vpop.xlane.xlu1 %1830  ;;  %v1834_v60 = vpop.xlane.xlu0 %1833 }
 0x4b6   :  { %3526 = vpow2.f32 %v1858_v58  ;;  %v1851_v61 = vsub.f32 %v1819_v19, %v1831_v59  ;;  %v1852_v62 = vsub.f32 %v4085_v14, %v1834_v60 }
 0x4b8   :  { %v1860_v63 = vmul.f32 1.442695, %v1851_v61  ;;  %v1862_v1 = vmul.f32 1.442695, %v1852_v62 }
 0x4b9   :  { %v886_v2 = vpop.permute.xlu1 %885 }
 0x4ba   :  { %3528 = vpow2.f32 %v1860_v63  ;;  %v1840_v3 = vpop.xlane.xlu0 %1839 }
 0x4bb   :  { %3530 = vpow2.f32 %v1862_v1  ;;  %v1854_v53 = vsub.f32 %v1822_v33, %v1840_v3 }
 0x4bd   :  { %v1866_v4 = vmul.f32 1.442695, %v1854_v53  ;;  %v890_v8 = vpop.permute.xlu1 %889 }
 0x4be   :  { %v1837_v48 = vpop.xlane.xlu0 %1836 }
 0x4bf   :  { %3532 = vpow2.f32 %v1866_v4  ;;  %v1853_v10 = vsub.f32 %v1821_v37, %v1837_v48 }
 0x4c1   :  { %v1864_v5 = vmul.f32 1.442695, %v1853_v10  ;;  %v894_v11 = vpop.permute.xlu1 %893 }
 0x4c2   :  { %v921_v12 = vcombine.low %v886_v2, %v894_v11  ;;  %v922_v13 = vcombine.high %v886_v2, %v894_v11  ;;  %v882_v15 = vpop.permute.xlu0 %881 }
 0x4c3   :  { %v4123_v18 = vpop.eup %3526  ;;  %3534 = vpow2.f32 %v1864_v5  ;;  %v905_v14 = vcombine.low %v882_v15, %v890_v8  ;;  %v906_v19 = vcombine.high %v882_v15, %v890_v8 }
 0x4c4   :  { %v929_v20 = vrot.slane %v921_v12, %v3932_v0  ;;  %v936_v21 = vrot.slane %v922_v13, %v3932_v0  ;;  %v1874_v22 = vsel %vm1201_vm6, %v4123_v18, 0.0 }
 0x4c5   :  { %v913_v23 = vrot.slane %v905_v14, %v3932_v0  ;;  %v920_v24 = vrot.slane %v906_v19, %v3932_v0  ;;  %1875 = vadd.xlane.f32.xlu0 %v1874_v22 }
 0x4c7   :  { %v4131_v25 = vpop.eup %3528  ;;  %v937_v26 = vcombine.low %v913_v23, %v929_v20  ;;  %v938_v27 = vcombine.high %v913_v23, %v929_v20  ;;  %v953_v28 = vcombine.low %v920_v24, %v936_v21  ;;  %v954_v29 = vcombine.high %v920_v24, %v936_v21 }
 0x4c8   :  { %v4133_v30 = vpop.eup %3530  ;;  %v1877_v33 = vsel %vm1201_vm6, %v4131_v25, 0.0 }
 0x4c9   :  { %v945_v34 = vrot.slane %v937_v26, %v3944_v9  ;;  %v952_v35 = vrot.slane %v938_v27, %v3944_v9  ;;  %v961_v36 = vrot.slane %v953_v28, %v3944_v9  ;;  %v968_v37 = vrot.slane %v954_v29, %v3944_v9  ;;  %1878 = vadd.xlane.f32.xlu1 %v1877_v33 }
 0x4ca   :  { %v1880_v6 = vsel %vm1201_vm6, %v4133_v30, 0.0 }
 0x4cb   :  { %v1041_v16 = vcombine.low %v945_v34, %v952_v35  ;;  %v3255_v38 = vcombine.high %v945_v34, %v952_v35  ;;  %v1057_v39 = vcombine.low %v961_v36, %v968_v37  ;;  %v3256_v40 = vcombine.high %v961_v36, %v968_v37  ;;  %1881 = vadd.xlane.f32.xlu0 %v1880_v6 }
 0x4cc   :  { %v4143_v41 = vpop.eup %3532 }
 0x4cd   :  { %v1048_v31 = vrot.slane %v1041_v16, %v3932_v0  ;;  %v1056_v32 = vrot.slane %v3255_v38, %v3932_v0  ;;  %v1064_v42 = vrot.slane %v1057_v39, %v3932_v0  ;;  %v1072_v43 = vrot.slane %v3256_v40, %v3932_v0 }
 0x4ce   :  { %v1886_v50 = vsel %vm1201_vm6, %v4143_v41, 0.0 }
 0x4cf   :  { %1887 = vadd.xlane.f32.xlu0 %v1886_v50  ;;  %v1073_v44 = vcombine.low %v1048_v31, %v1056_v32  ;;  %v1089_v51 = vcombine.low %v1064_v42, %v1072_v43  ;;  %v1074_v47 = vcombine.high %v1048_v31, %v1056_v32  ;;  %v1090_v17 = vcombine.high %v1064_v42, %v1072_v43 }
 0x4d0   :  { %v4151_v46 = vpop.eup %3534 }
 0x4d1   :  { %v1883_v56 = vsel %vm1201_vm6, %v4151_v46, 0.0  ;;  %v1081_v57 = vrot.slane %v1073_v44, %v3944_v9  ;;  %v1097_v58 = vrot.slane %v1089_v51, %v3944_v9  ;;  %v1088_v59 = vrot.slane %v1074_v47, %v3944_v9 }
 0x4d2   :  { %1884 = vadd.xlane.f32.xlu1 %v1883_v56  ;;  %v1104_v60 = vrot.slane %v1090_v17, %v3944_v9 }
 0x4d3   :  { %v1105_v61 = vcombine.low %v1081_v57, %v1097_v58  ;;  %v1106_v62 = vcombine.high %v1081_v57, %v1097_v58 }
 0x4d4   :  { %v1107_v63 = vcombine.low %v1088_v59, %v1104_v60  ;;  %v1108_v1 = vcombine.high %v1088_v59, %v1104_v60 }
 0x4d5   :  { %3413 = vmatpush3.msra.mxu0 %v1105_v61  ;;  %3418 = vmatpush3.msra.mxu1 %v1106_v62 }
 0x4d6   :  { %3422 = vmatprep.subr.mxu0 %v3755_v54  ;;  %3427 = vmatprep.subr.mxu1 %v3755_v54 }
 0x4f2   :  { %v1843_v2 = vpop.xlane.xlu1 %1842 }
 0x4f3   :  { %v1855_v3 = vsub.f32 %v4104_v49, %v1843_v2  ;;  %v1846_v53 = vpop.xlane.xlu0 %1845 }
 0x4f4   :  { %v1856_v4 = vsub.f32 %v4106_v45, %v1846_v53 }
 0x4f5   :  { %v1868_v8 = vmul.f32 1.442695, %v1855_v3 }
 0x4f6   :  { %v1870_v48 = vmul.f32 1.442695, %v1856_v4  ;;  %v1849_v10 = vpop.xlane.xlu1 %1848 }
 0x4f7   :  { %3536 = vpow2.f32 %v1868_v8  ;;  %v1857_v5 = vsub.f32 %v4111_v7, %v1849_v10  ;;  %v884_v14 = vpop.permute.xlu0 %883 }
 0x4f8   :  { %3538 = vpow2.f32 %v1870_v48 }
 0x4f9   :  { %v1872_v11 = vmul.f32 1.442695, %v1857_v5 }
 0x4fa   :  { %v888_v19 = vpop.permute.xlu1 %887 }
 0x4fb   :  { %3540 = vpow2.f32 %v1872_v11 }
 0x504   :  { %v4164_v12 = vpop.eup %3536 }
 0x505   :  { %v4166_v13 = vpop.eup %3538  ;;  %v1889_v15 = vsel %vm1201_vm6, %v4164_v12, 0.0 }
 0x506   :  { %1890 = vadd.xlane.f32.xlu1 %v1889_v15  ;;  %v1892_v49 = vsel %vm1201_vm6, %v4166_v13, 0.0 }
 0x507   :  { %1893 = vadd.xlane.f32.xlu0 %v1892_v49 }
 0x508   :  { %v4172_v45 = vpop.eup %3540 }
 0x509   :  { %v1895_v7 = vsel %vm1201_vm6, %v4172_v45, 0.0 }
 0x50a   :  { %1896 = vadd.xlane.f32.xlu1 %v1895_v7 }
 0x51b   :  { %895 = vrot.lane.b32.xlu1 %v3921_v55, %s3759_s5 }
 0x51d   :  { %891 = vrot.lane.b32.xlu0 %v3912_v52, %s3759_s5 }
 0x54e   :  { %v1876_v20 = vpop.xlane.xlu0 %1875 }
 0x54f   :  { %3542 = vrcp.f32 %v1876_v20 }
 0x552   :  { %v1879_v21 = vpop.xlane.xlu1 %1878 }
 0x553   :  { %3544 = vrcp.f32 %v1879_v21 }
 0x554   :  { %v1882_v22 = vpop.xlane.xlu0 %1881 }
 0x555   :  { %3546 = vrcp.f32 %v1882_v22 }
 0x558   :  { %v1888_v29 = vpop.xlane.xlu0 %1887 }
 0x55b   :  { %v1885_v23 = vpop.xlane.xlu1 %1884 }
 0x55c   :  { %v3543_v24 = vpop.eup %3542  ;;  %3548 = vrcp.f32 %v1885_v23 }
 0x55d   :  { %v1914_v26 = vmul.f32 %v3543_v24, %v4123_v18  ;;  %3550 = vrcp.f32 %v1888_v29 }
 0x55f   :  { %3415 = vmatmul.mubr.msk.f32.vlgmr.msra.gmra.mxu0 %vm1201_vm6, %v1914_v26 }
 0x560   :  { %v3545_v27 = vpop.eup %3544  ;;  %3423 = vmatpush3.msra.mxu0 %v1107_v63  ;;  %3424 = vmatprep.mubr.msk.f32.mxu0 %vm3756_vm5, %v3755_v54 }
 0x561   :  { %v1915_v52 = vmul.f32 %v3545_v27, %v4131_v25  ;;  %3432 = vmatprep.subr.mxu0 %v3755_v54 }
 0x562   :  { %v3547_v55 = vpop.eup %3546 }
 0x563   :  { %3420 = vmatmul.mubr.msk.f32.vlgmr.msra.gmra.mxu1 %vm1201_vm6, %v1915_v52  ;;  %v1916_v28 = vmul.f32 %v3547_v55, %v4133_v30 }
 0x564   :  { %3428 = vmatpush3.msra.mxu1 %v1108_v1  ;;  %3429 = vmatprep.mubr.msk.f32.mxu1 %vm3756_vm5, %v3755_v54 }
 0x565   :  { %3425 = vmatmul.mubr.msk.f32.vlgmr.msra.gmra.mxu0 %vm1201_vm6, %v1916_v28  ;;  %3437 = vmatprep.subr.mxu1 %v3755_v54 }
 0x566   :  { %3434 = vmatprep.mubr.msk.f32.mxu0 %vm3756_vm5, %v3755_v54 }
 0x569   :  { %v3549_v18 = vpop.eup %3548 }
 0x56a   :  { %v1917_v25 = vmul.f32 %v3549_v18, %v4151_v46  ;;  %v3551_v4 = vpop.eup %3550 }
 0x56c   :  { %3430 = vmatmul.mubr.msk.f32.vlgmr.msra.gmra.mxu1 %vm1201_vm6, %v1917_v25 }
 0x56d   :  { %3439 = vmatprep.mubr.msk.f32.mxu1 %vm3756_vm5, %v3755_v54 }
 0x58f   :  { %v1891_v30 = vpop.xlane.xlu1 %1890 }
 0x590   :  { %v1894_v33 = vpop.xlane.xlu0 %1893  ;;  %3552 = vrcp.f32 %v1891_v30 }
 0x591   :  { %3554 = vrcp.f32 %v1894_v33 }
 0x593   :  { %v1897_v34 = vpop.xlane.xlu1 %1896 }
 0x594   :  { %v892_v35 = vpop.permute.xlu0 %891  ;;  %3556 = vrcp.f32 %v1897_v34 }
 0x595   :  { %v973_v36 = vcombine.low %v884_v14, %v892_v35  ;;  %v974_v37 = vcombine.high %v884_v14, %v892_v35  ;;  %v1918_v14 = vmul.f32 %v3551_v4, %v4143_v41 }
 0x597   :  { %v896_v6 = vpop.permute.xlu1 %895  ;;  %v981_v39 = vrot.slane %v973_v36, %v3932_v0  ;;  %v988_v40 = vrot.slane %v974_v37, %v3932_v0 }
 0x598   :  { %v989_v16 = vcombine.low %v888_v19, %v896_v6  ;;  %v990_v38 = vcombine.high %v888_v19, %v896_v6 }
 0x59a   :  { %v997_v31 = vrot.slane %v989_v16, %v3932_v0  ;;  %v1004_v32 = vrot.slane %v990_v38, %v3932_v0 }
 0x59c   :  { %v1005_v42 = vcombine.low %v981_v39, %v997_v31  ;;  %v1006_v43 = vcombine.high %v981_v39, %v997_v31  ;;  %v1021_v50 = vcombine.low %v988_v40, %v1004_v32  ;;  %v1022_v44 = vcombine.high %v988_v40, %v1004_v32 }
 0x59d   :  { %v3553_v8 = vpop.eup %3552 }
 0x59e   :  { %v1013_v51 = vrot.slane %v1005_v42, %v3944_v9  ;;  %v1020_v47 = vrot.slane %v1006_v43, %v3944_v9  ;;  %v1029_v17 = vrot.slane %v1021_v50, %v3944_v9  ;;  %v1036_v46 = vrot.slane %v1022_v44, %v3944_v9  ;;  %v3555_v15 = vpop.eup %3554 }
 0x59f   :  { %v1919_v19 = vmul.f32 %v3553_v8, %v4164_v12  ;;  %v1920_v23 = vmul.f32 %v3555_v15, %v4166_v13 }
 0x5a0   :  { %v1109_v56 = vcombine.low %v1013_v51, %v1020_v47  ;;  %v3257_v57 = vcombine.high %v1013_v51, %v1020_v47  ;;  %v1125_v58 = vcombine.low %v1029_v17, %v1036_v46  ;;  %v3258_v59 = vcombine.high %v1029_v17, %v1036_v46 }
 0x5a1   :  { %v3557_v20 = vpop.eup %3556 }
 0x5a2   :  { %v1116_v60 = vrot.slane %v1109_v56, %v3932_v0  ;;  %v1124_v61 = vrot.slane %v3257_v57, %v3932_v0  ;;  %v1132_v62 = vrot.slane %v1125_v58, %v3932_v0  ;;  %v1140_v63 = vrot.slane %v3258_v59, %v3932_v0 }
 0x5a3   :  { %v1921_v41 = vmul.f32 %v3557_v20, %v4172_v45 }
 0x5a4   :  { %v1141_v1 = vcombine.low %v1116_v60, %v1124_v61  ;;  %v1157_v2 = vcombine.low %v1132_v62, %v1140_v63  ;;  %v1142_v3 = vcombine.high %v1116_v60, %v1124_v61  ;;  %v1158_v53 = vcombine.high %v1132_v62, %v1140_v63 }
 0x5a6   :  { %v1149_v48 = vrot.slane %v1141_v1, %v3944_v9  ;;  %v1165_v10 = vrot.slane %v1157_v2, %v3944_v9  ;;  %v1156_v5 = vrot.slane %v1142_v3, %v3944_v9  ;;  %v1172_v11 = vrot.slane %v1158_v53, %v3944_v9 }
 0x5a8   :  { %v1173_v49 = vcombine.low %v1149_v48, %v1165_v10  ;;  %v1174_v7 = vcombine.high %v1149_v48, %v1165_v10  ;;  %v1175_v21 = vcombine.low %v1156_v5, %v1172_v11  ;;  %v1176_v22 = vcombine.high %v1156_v5, %v1172_v11 }
 0x5aa   :  { %3433 = vmatpush3.msra.mxu0 %v1173_v49  ;;  %3438 = vmatpush3.msra.mxu1 %v1174_v7 }
 0x5ab   :  { %3435 = vmatmul.mubr.msk.f32.vlgmr.msra.gmra.mxu0 %vm1201_vm6, %v1918_v14  ;;  %3440 = vmatmul.mubr.msk.f32.vlgmr.msra.gmra.mxu1 %vm1201_vm6, %v1919_v19 }
 0x5ac   :  { %3442 = vmatprep.subr.mxu0 %v3755_v54  ;;  %3447 = vmatprep.subr.mxu1 %v3755_v54 }
 0x5ad   :  { %3443 = vmatpush3.msra.mxu0 %v1175_v21  ;;  %3448 = vmatpush3.msra.mxu1 %v1176_v22 }
 0x5ae   :  { %3444 = vmatprep.mubr.msk.f32.mxu0 %vm3756_vm5, %v3755_v54  ;;  %3449 = vmatprep.mubr.msk.f32.mxu1 %vm3756_vm5, %v3755_v54 }
 0x5af   :  { %3445 = vmatmul.mubr.msk.f32.vlgmr.msra.gmra.mxu0 %vm1201_vm6, %v1920_v23  ;;  %3450 = vmatmul.mubr.msk.f32.vlgmr.msra.gmra.mxu1 %vm1201_vm6, %v1921_v41 }
 0x61f   :  { %v1991_v12 = vpop.f32.mrf.mxu0 }
 0x621   :  { %v3416_v24 = vpop.f32.mrf.mxu0 }
 0x623   :  { %v2064_v26 = vpop.f32.mrf.mxu1 }
 0x625   :  { %v2137_v27 = vpop.f32.mrf.mxu0  ;;  %v3421_v52 = vpop.f32.mrf.mxu1 }
 0x626   :  { %v2506_v28 = vcombine.low %v1991_v12, %v2137_v27  ;;  %v2507_v13 = vcombine.high %v1991_v12, %v2137_v27  ;;  %v2812_v27 = vld [vmem:[#allocation8 + $0x10] sm:$0xff] }
 0x627   :  { %v3426_v55 = vpop.f32.mrf.mxu0 }
 0x628   :  { %v2514_v30 = vrot.slane %v2506_v28, %v3932_v0  ;;  %v2521_v54 = vrot.slane %v2507_v13, %v3932_v0 }
 0x62c   :  { %v2210_v18 = vpop.f32.mrf.mxu1 }
 0x62d   :  { %v2522_v45 = vcombine.low %v2064_v26, %v2210_v18  ;;  %v2523_v25 = vcombine.high %v2064_v26, %v2210_v18  ;;  %v2813_v26 = vld [vmem:[#allocation8 + $0x18] sm:$0xff] }
 0x62e   :  { %v3431_v29 = vpop.f32.mrf.mxu1  ;;  %3452 = vmatprep.subr.mxu0 %v2813_v26 }
 0x62f   :  { %v2530_v33 = vrot.slane %v2522_v45, %v3932_v0  ;;  %v2537_v34 = vrot.slane %v2523_v25, %v3932_v0  ;;  %3453 = vmatpush3.msra.mxu0 %v2813_v26 }
 0x630   :  { %3454 = vmatprep.subr.mxu0 %v2812_v27 }
 0x631   :  { %v2538_v35 = vcombine.low %v2514_v30, %v2530_v33  ;;  %v2539_v36 = vcombine.high %v2514_v30, %v2530_v33  ;;  %v2554_v37 = vcombine.low %v2521_v54, %v2537_v34  ;;  %v2555_v6 = vcombine.high %v2521_v54, %v2537_v34  ;;  %3455 = vmatpush3.msra.mxu0 %v2812_v27  ;;  %v2811_v30 = vld [vmem:[#allocation8 + $0x8] sm:$0xff]  ;;  %v2810_v54 = vld [vmem:[#allocation8] sm:$0xff] }
 0x632   :  { %3456 = vmatprep.subr.mxu0 %v2811_v30 }
 0x633   :  { %v2546_v16 = vrot.slane %v2538_v35, %v3944_v9  ;;  %v2553_v38 = vrot.slane %v2539_v36, %v3944_v9  ;;  %v2562_v39 = vrot.slane %v2554_v37, %v3944_v9  ;;  %v2569_v40 = vrot.slane %v2555_v6, %v3944_v9  ;;  %3457 = vmatpush3.msra.mxu0 %v2811_v30 }
 0x634   :  { %3458 = vmatprep.subr.mxu0 %v2810_v54 }
 0x635   :  { %v2642_v31 = vcombine.low %v2546_v16, %v2553_v38  ;;  %v3283_v32 = vcombine.high %v2546_v16, %v2553_v38  ;;  %v2658_v42 = vcombine.low %v2562_v39, %v2569_v40  ;;  %v3284_v43 = vcombine.high %v2562_v39, %v2569_v40  ;;  %3459 = vmatpush3.msra.mxu0 %v2810_v54  ;;  %v3103_v54 = vld [vmem:[#allocation13] sm:$0xff] }
 0x637   :  { %v2649_v50 = vrot.slane %v2642_v31, %v3932_v0  ;;  %v2657_v44 = vrot.slane %v3283_v32, %v3932_v0  ;;  %v2665_v51 = vrot.slane %v2658_v42, %v3932_v0  ;;  %v2673_v47 = vrot.slane %v3284_v43, %v3932_v0 }
 0x639   :  { %v2674_v17 = vcombine.low %v2649_v50, %v2657_v44  ;;  %v2690_v46 = vcombine.low %v2665_v51, %v2673_v47  ;;  %v2675_v56 = vcombine.high %v2649_v50, %v2657_v44  ;;  %v2691_v57 = vcombine.high %v2665_v51, %v2673_v47 }
 0x63b   :  { %v4241_v58 = vrot.slane %v2674_v17, %v3944_v9  ;;  %v4244_v59 = vrot.slane %v2690_v46, %v3944_v9  ;;  %v2689_v62 = vrot.slane %v2675_v56, %v3944_v9  ;;  %v2705_v63 = vrot.slane %v2691_v57, %v3944_v9 }
 0x63d   :  { %v2707_v60 = vcombine.high %v4241_v58, %v4244_v59  ;;  %v2706_v61 = vcombine.low %v4241_v58, %v4244_v59  ;;  %v2708_v1 = vcombine.low %v2689_v62, %v2705_v63  ;;  %v2709_v2 = vcombine.high %v2689_v62, %v2705_v63  ;;  %v2907_v58 = vld [vmem:[#allocation10 + $0x18] sm:$0xff] }
 0x63e   :  { %v2999_v59 = vld [vmem:[#allocation11 + $0x18] sm:$0xff]  ;;  %3463 = vmatprep.subr.mxu1 %v2907_v58 }
 0x63f   :  { %2780 = vrot.lane.b32.xlu0 %v2707_v60, %s3745_s27  ;;  %3474 = vmatprep.subr.mxu0 %v2999_v59 }
 0x640   :  { %3464 = vmatpush3.msra.mxu1 %v2907_v58 }
 0x643   :  { %2788 = vrot.lane.b32.xlu0 %v2708_v1, %s3760_s23 }
 0x647   :  { %2796 = vrot.lane.b32.xlu0 %v2709_v2, %s3761_s24  ;;  %v4281_v2 = vld [vmem:[#allocation2] sm:$0xff] }
 0x64b   :  { %3095 = vrot.lane.b32.xlu0 %v4281_v2, %s3762_s25 }
 0x66b   :  { %v2283_v3 = vpop.f32.mrf.mxu0  ;;  %v2356_v53 = vpop.f32.mrf.mxu1 }
 0x66d   :  { %v3436_v4 = vpop.f32.mrf.mxu0  ;;  %v3441_v8 = vpop.f32.mrf.mxu1 }
 0x66e   :  { %v2904_v4 = vld [vmem:[#allocation10] sm:$0xff]  ;;  %v2997_v8 = vld [vmem:[#allocation11 + $0x8] sm:$0xff] }
 0x66f   :  { %v2429_v48 = vpop.f32.mrf.mxu0  ;;  %v2502_v10 = vpop.f32.mrf.mxu1 }
 0x670   :  { %v2574_v5 = vcombine.low %v2283_v3, %v2429_v48  ;;  %v2575_v11 = vcombine.high %v2283_v3, %v2429_v48  ;;  %v2590_v15 = vcombine.low %v2356_v53, %v2502_v10  ;;  %v2591_v49 = vcombine.high %v2356_v53, %v2502_v10  ;;  %v2998_v3 = vld [vmem:[#allocation11 + $0x10] sm:$0xff]  ;;  %v2905_v53 = vld [vmem:[#allocation10 + $0x8] sm:$0xff]  ;;  %v2996_v48 = vld [vmem:[#allocation11] sm:$0xff] }
 0x671   :  { %v3446_v7 = vpop.f32.mrf.mxu0  ;;  %v3451_v14 = vpop.f32.mrf.mxu1  ;;  %v4285_v10 = vld [vmem:[#allocation2 + $0x8] sm:$0xff] }
 0x672   :  { %v2582_v19 = vrot.slane %v2574_v5, %v3932_v0  ;;  %v2589_v20 = vrot.slane %v2575_v11, %v3932_v0  ;;  %v2598_v21 = vrot.slane %v2590_v15, %v3932_v0  ;;  %v2605_v22 = vrot.slane %v2591_v49, %v3932_v0  ;;  %v3287_v5 = vld [vmem:[%s4324_s7] ss:$0 sm:$0xff] }
 0x674   :  { %v2606_v23 = vcombine.low %v2582_v19, %v2598_v21  ;;  %v2607_v41 = vcombine.high %v2582_v19, %v2598_v21  ;;  %v2622_v12 = vcombine.low %v2589_v20, %v2605_v22  ;;  %v2623_v24 = vcombine.high %v2589_v20, %v2605_v22  ;;  %v3106_v20 = vld [vmem:[#allocation13 + $0x18] sm:$0xff]  ;;  %v3105_v21 = vld [vmem:[#allocation13 + $0x10] sm:$0xff]  ;;  %v3104_v22 = vld [vmem:[#allocation13 + $0x8] sm:$0xff] }
 0x676   :  { %v2614_v52 = vrot.slane %v2606_v23, %v3944_v9  ;;  %v2621_v55 = vrot.slane %v2607_v41, %v3944_v9  ;;  %v2630_v28 = vrot.slane %v2622_v12, %v3944_v9  ;;  %v2637_v13 = vrot.slane %v2623_v24, %v3944_v9  ;;  %v3290_v23 = vld [vmem:[%s4326_s9] ss:$0 sm:$0xff]  ;;  %s3763_s9 = smov [#allocation14]  }
 0x677   :  { %s3227_s30 = sshll.u32 %s3763_s9, 4  ;;  %s3228_s30 = int_to_ptr.vmem [resolvable:$true] %s3227_s30 }
 0x678   :  { %v2710_v18 = vcombine.low %v2614_v52, %v2621_v55  ;;  %v3285_v45 = vcombine.high %v2614_v52, %v2621_v55  ;;  %v2726_v25 = vcombine.low %v2630_v28, %v2637_v13  ;;  %v3286_v29 = vcombine.high %v2630_v28, %v2637_v13  ;;  %s3712_s0 = scalar_lea.vmem %s3228_s30, 256  ;;  %p3717_p8 = scmp.lt.s32.totalorder %s3228_s30, %s3228_s30 }
 0x679   :  { %p3713_p7 = scmp.ne.s32.totalorder %s3228_s30, %s3712_s0  ;;  %p3718_p9 = scmp.lt.s32.totalorder %s3712_s0, %s3712_s0 }
 0x67a   :  { %v2717_v33 = vrot.slane %v2710_v18, %v3932_v0  ;;  %v2725_v34 = vrot.slane %v3285_v45, %v3932_v0  ;;  %v2733_v35 = vrot.slane %v2726_v25, %v3932_v0  ;;  %v2741_v36 = vrot.slane %v3286_v29, %v3932_v0 }
 0x67b   :  { %p3719_p10 = por %p3718_p9, %p3717_p8 }
 0x67c   :  { %v2742_v37 = vcombine.low %v2717_v33, %v2725_v34  ;;  %v2758_v6 = vcombine.low %v2733_v35, %v2741_v36  ;;  %v2743_v16 = vcombine.high %v2717_v33, %v2725_v34  ;;  %v2759_v38 = vcombine.high %v2733_v35, %v2741_v36 }
 0x67d   :  { %p3720_p11 = pnand %p3719_p10, %p3713_p7 }
 0x67e   :  { %v2750_v39 = vrot.slane %v2742_v37, %v3944_v9  ;;  %v2766_v40 = vrot.slane %v2758_v6, %v3944_v9  ;;  %v2757_v42 = vrot.slane %v2743_v16, %v3944_v9  ;;  %v2773_v43 = vrot.slane %v2759_v38, %v3944_v9 }
 0x680   :  { %v2775_v31 = vcombine.high %v2750_v39, %v2766_v40  ;;  %v2774_v32 = vcombine.low %v2750_v39, %v2766_v40  ;;  %v2776_v0 = vcombine.low %v2757_v42, %v2773_v43  ;;  %v2777_v50 = vcombine.high %v2757_v42, %v2773_v43 }
 0x682   :  { %2782 = vrot.lane.b32.xlu1 %v2775_v31, %s3745_s27 }
 0x686   :  { %2790 = vrot.lane.b32.xlu1 %v2776_v0, %s3760_s23 }
 0x68a   :  { %2798 = vrot.lane.b32.xlu1 %v2777_v50, %s3761_s24 }
 0x68e   :  { %3097 = vrot.lane.b32.xlu1 %v4285_v10, %s3762_s25 }
 0x6b1   :  { %v2781_v44 = vpop.permute.xlu0 %2780 }
 0x6b2   :  { %v2802_v47 = vsel %vm1201_vm6, %v2706_v61, %v2781_v44  ;;  %v2906_v61 = vld [vmem:[#allocation10 + $0x10] sm:$0xff] }
 0x6b3   :  { %3465 = vmatprep.subr.mxu1 %v2906_v61 }
 0x6b4   :  { %3466 = vmatpush3.msra.mxu1 %v2906_v61 }
 0x6b5   :  { %v2789_v51 = vpop.permute.xlu0 %2788  ;;  %3467 = vmatprep.subr.mxu1 %v2905_v53 }
 0x6b6   :  { %v2805_v17 = vsel %vm2804_vm15, %v2802_v47, %v2789_v51  ;;  %3468 = vmatpush3.msra.mxu1 %v2905_v53 }
 0x6b7   :  { %3469 = vmatprep.subr.mxu1 %v2904_v4 }
 0x6b8   :  { %3470 = vmatpush3.msra.mxu1 %v2904_v4 }
 0x6b9   :  { %v2797_v46 = vpop.permute.xlu0 %2796  ;;  %3485 = vmatprep.subr.mxu1 %v3106_v20 }
 0x6ba   :  { %v2808_v9 = vsel %vm2807_vm1, %v2805_v17, %v2797_v46 }
 0x6bb   :  { %3460 = vmatprep.mubr.msk.f32.mxu0 %vm139_vm0, %v2808_v9 }
 0x6bd   :  { %v3096_v35 = vpop.permute.xlu0 %3095 }
 0x6f4   :  { %v2783_v56 = vpop.permute.xlu1 %2782 }
 0x6f5   :  { %v2803_v60 = vsel %vm1201_vm6, %v2774_v32, %v2783_v56 }
 0x6f8   :  { %v2791_v57 = vpop.permute.xlu1 %2790 }
 0x6f9   :  { %v2806_v62 = vsel %vm2804_vm15, %v2803_v60, %v2791_v57 }
 0x6fc   :  { %v2799_v63 = vpop.permute.xlu1 %2798 }
 0x6fd   :  { %v2809_v1 = vsel %vm2807_vm1, %v2806_v62, %v2799_v63 }
 0x6fe   :  { %3461 = vmatmul.mubr.msk.f32.vlgmr.msra.gmra.mxu0 %vm139_vm0, %v2809_v1 }
 0x6ff   :  { %3482 = vmatprep.mubr.msk.f32.mxu0 %vm139_vm0, %v4281_v2  ;;  %3475 = vmatpush3.msra.mxu0 %v2999_v59 }
 0x700   :  { %3476 = vmatprep.subr.mxu0 %v2998_v3  ;;  %v3098_v33 = vpop.permute.xlu1 %3097 }
 0x701   :  { %3477 = vmatpush3.msra.mxu0 %v2998_v3 }
 0x702   :  { %3478 = vmatprep.subr.mxu0 %v2997_v8 }
 0x703   :  { %3479 = vmatpush3.msra.mxu0 %v2997_v8 }
 0x704   :  { %3480 = vmatprep.subr.mxu0 %v2996_v48 }
 0x705   :  { %3481 = vmatpush3.msra.mxu0 %v2996_v48 }
 0x706   :  { %3483 = vmatmul.mubr.msk.f32.vlgmr.msra.gmra.mxu0 %vm139_vm0, %v4285_v10 }
 0x7be   :  { %v3462_v11 = vpop.f32.mrf.mxu0 }
 0x7bf   :  { %v2899_v15 = vadd.f32 %v3462_v11, %v3287_v5 }
 0x7c0   :  { %v2893_v49 = vpop.f32.mrf.mxu0 }
 0x7c1   :  { %v2894_v7 = vadd.f32 %v3287_v5, %v2893_v49  ;;  %v2903_v19 = vmax.f32 %v2899_v15, 0.0 }
 0x7c3   :  { %v2902_v14 = vmax.f32 %v2894_v7, 0.0 }
 0x7c5   :  { %3471 = vmatprep.mubr.msk.f32.mxu1 %vm139_vm0, %v2902_v14 }
 0x7c6   :  { %3472 = vmatmul.mubr.msk.f32.vlgmr.msra.gmra.mxu1 %vm139_vm0, %v2903_v19  ;;  %v3484_v12 = vpop.f32.mrf.mxu0 }
 0x7c7   :  { %3486 = vmatpush3.msra.mxu1 %v3106_v20 }
 0x7c8   :  { %3487 = vmatprep.subr.mxu1 %v3105_v21  ;;  %v3072_v55 = vpop.f32.mrf.mxu0 }
 0x7c9   :  { %3488 = vmatpush3.msra.mxu1 %v3105_v21 }
 0x7ca   :  { %3489 = vmatprep.subr.mxu1 %v3104_v22 }
 0x7cb   :  { %3490 = vmatpush3.msra.mxu1 %v3104_v22 }
 0x7cc   :  { %3491 = vmatprep.subr.mxu1 %v3103_v54 }
 0x7cd   :  { %3492 = vmatpush3.msra.mxu1 %v3103_v54 }
 0x886   :  { %v3473_v41 = vpop.f32.mrf.mxu1 }
 0x887   :  { %v2993_v24 = vadd.f32 %v3473_v41, %v3290_v23 }
 0x888   :  { %v2987_v26 = vpop.f32.mrf.mxu1 }
 0x889   :  { %v2988_v27 = vadd.f32 %v3290_v23, %v2987_v26  ;;  %v3082_v52 = vadd.f32 %v3484_v12, %v2993_v24 }
 0x88b   :  { %v3296_v28 = vmul.f32 -1.442695, %v3082_v52  ;;  %v3081_v13 = vadd.f32 %v3072_v55, %v2988_v27 }
 0x88d   :  { %3558 = vpow2.f32 %v3296_v28  ;;  %v3295_v18 = vmul.f32 -1.442695, %v3081_v13 }
 0x88f   :  { %3560 = vpow2.f32 %v3295_v18 }
 0x89a   :  { %v3559_v45 = vpop.eup %3558 }
 0x89b   :  { %v3090_v25 = vadd.f32 1.0, %v3559_v45 }
 0x89c   :  { %v3561_v29 = vpop.eup %3560 }
 0x89d   :  { %3562 = vrcp.f32 %v3090_v25  ;;  %v3089_v30 = vadd.f32 1.0, %v3561_v29 }
 0x89f   :  { %3564 = vrcp.f32 %v3089_v30 }
 0x8aa   :  { %v3563_v34 = vpop.eup %3562 }
 0x8ab   :  { %v3102_v36 = vmul.f32 %v3563_v34, %v3098_v33  ;;  %v3205_v44 = vsub.f32 1.0, %v3563_v34 }
 0x8ac   :  { %v3565_v37 = vpop.eup %3564 }
 0x8ad   :  { %v3101_v6 = vmul.f32 %v3565_v37, %v3096_v35  ;;  %3111 = vrot.lane.b32.xlu1 %v3102_v36, %s3754_s22  ;;  %v3204_v51 = vsub.f32 1.0, %v3565_v37  ;;  %v3207_v17 = vmul.f32 %v4285_v10, %v3205_v44 }
 0x8af   :  { %3109 = vrot.lane.b32.xlu0 %v3101_v6, %s3754_s22  ;;  %v3206_v57 = vmul.f32 %v4281_v2, %v3204_v51 }
 0x91f   :  { %v3112_v38 = vpop.permute.xlu1 %3111 }
 0x921   :  { %v3110_v16 = vpop.permute.xlu0 %3109 }
 0x922   :  { %3493 = vmatprep.mubr.msk.f32.mxu1 %vm139_vm0, %v3110_v16 }
 0x923   :  { %3494 = vmatmul.mubr.msk.f32.vlgmr.msra.gmra.mxu1 %vm139_vm0, %v3112_v38 }
 0x9e3   :  { %v3495_v39 = vpop.f32.mrf.mxu1 }
 0x9e4   :  { %3196 = vrot.lane.b32.xlu1 %v3495_v39, %s3759_s5 }
 0x9e5   :  { %v3183_v40 = vpop.f32.mrf.mxu1 }
 0x9e6   :  { %3194 = vrot.lane.b32.xlu0 %v3183_v40, %s3759_s5 }
 0xa56   :  { %v3197_v31 = vpop.permute.xlu1 %3196 }
 0xa57   :  { %v3201_v32 = vadd.f32 %v3197_v31, %v2993_v24 }
 0xa58   :  { %v3195_v42 = vpop.permute.xlu0 %3194 }
 0xa59   :  { %3566 = vtanh.f32 %v3201_v32  ;;  %v3200_v43 = vadd.f32 %v3195_v42, %v2988_v27 }
 0xa5b   :  { %3568 = vtanh.f32 %v3200_v43 }
 0xa66   :  { %v3567_v0 = vpop.eup %3566 }
 0xa67   :  { %3212 = vrot.lane.b32.xlu1 %v3567_v0, %s3759_s5 }
 0xa68   :  { %v3569_v50 = vpop.eup %3568 }
 0xa69   :  { %3210 = vrot.lane.b32.xlu0 %v3569_v50, %s3759_s5 }
 0xad9   :  { %v3213_v47 = vpop.permute.xlu1 %3212 }
 0xada   :  { %v3217_v46 = vmul.f32 %v3563_v34, %v3213_v47 }
 0xadb   :  { %v3211_v9 = vpop.permute.xlu0 %3210 }
 0xadc   :  { %v3219_v56 = vadd.f32 %v3217_v46, %v3207_v17  ;;  %v3216_v60 = vmul.f32 %v3565_v37, %v3211_v9 }
 0xade   :  { %3221 = vst.msk [vmem:[#allocation14 + $0x8] sm:$0xff] %vm139_vm0, %v3219_v56  ;;  %v3218_v62 = vadd.f32 %v3216_v60, %v3206_v57 }
 0xae0   :  { %3220 = vst.msk [vmem:[#allocation14] sm:$0xff] %vm139_vm0, %v3218_v62 }
 0xae1   :  { %3723 = shalt.err (!%p3720_p11)
}
 0xae2   :  { %3233 = dma.vmem_to_hbm [thread:$0]  %s3228_s30, 256, %s4329_s12, [#allocation4], %s3744_s26, %s3744_s26, %s3745_s27  }
 0xae3   :  { %3740 = dma.done.wait [#allocation4], 256  }
 0xae4   :  { %3741 = vsyncadd [#allocation4], 4294967040 }
 0xae5   :  { %3237 = vsyncpa [#allocation3], 1 }
 0xae6   :  { %3238 = vsyncpa [#allocation6], 1 }
 0xae7   :  { %3239 = vsyncpa [#allocation9], 1 }
 0xae8   :  { %3240 = vsyncpa [#allocation12], 1 }
 0xae9   :  { %3241 = vsyncpa [#allocation4], 1 }

</bundles_post_ra>
